<compile_context>
chip_gen: v6e
topology: v6e:2x2x1
jax: 0.10.0
libtpu: 0.0.40
codegen_flags: <defaults>
</compile_context>

<pallas_src>
import jax
import jax.numpy as jnp
from jax import lax
from jax.experimental import pallas as pl
from jax.experimental.pallas import tpu as pltpu


def rnn_fc_kernel(x_ref, h0_ref, wih0_ref, wihr_ref, whh_ref, b_ref,
                  wfc_ref, bfc_ref, hn_ref, fc_ref):
    """Full multi-layer RNN recurrence + Linear head, everything VMEM-resident.

    x_ref:    (T, B, 1)    raw input, time-major (input_size == 1)
    h0_ref:   (L, B, H)    initial hidden state
    wih0_ref: (1, H)       layer-0 W_ih^T (single row, input_size == 1)
    wihr_ref: (L-1, H, H)  W_ih^T for layers 1..L-1
    whh_ref:  (L, H, H)    W_hh^T per layer
    b_ref:    (L, 1, H)    b_ih + b_hh per layer
    wfc_ref:  (O, H)       fc weight
    bfc_ref:  (1, O)       fc bias
    hn_ref:   (L, B, H)    final hidden state per layer             (output)
    fc_ref:   (T, B, O)    fc(last-layer output) per (t, b)         (output)
    """
    T, B, _ = x_ref.shape
    L, _, H = h0_ref.shape
    O = fc_ref.shape[-1]

    # ---- hoisted, recurrence-free work --------------------------------------
    # Layer-0 input projection: x * W_ih_row + bias, a VPU broadcast (no MXU).
    w0 = wih0_ref[...].reshape(1, 1, H)
    inp0 = x_ref[...] * w0 + b_ref[0].reshape(1, 1, H)              # (T, B, H)

    # Hoist weight loads and bias broadcasts out of the unrolled recurrence.
    whh = [whh_ref[l] for l in range(L)]                            # (H, H) each
    wih = [wihr_ref[l] for l in range(L - 1)]                       # (H, H) each
    bias = [jnp.broadcast_to(b_ref[l], (B, H)) for l in range(1, L)]
    wfc_full = wfc_ref[...]                                         # (O, H)
    bfc = bfc_ref[...]                                              # (1, O)
    wfc_row = wfc_full.reshape(1, H) if O == 1 else None

    # ---- wavefront-unrolled recurrence --------------------------------------
    # Walk the (t + l) diagonal: within a diagonal the L layers' updates are
    # independent, so their h @ W_hh -> tanh chains can be interleaved by the
    # scheduler. Everything is static, hence fully unrolled straight-line code.
    h = [h0_ref[l] for l in range(L)]                               # (B, H) each
    outs = [[None] * T for _ in range(L - 1)]   # layer-l outputs feeding layer l+1
    for d in range(T + L - 1):
        for l in range(L):
            t = d - l
            if not (0 <= t < T):
                continue
            if l == 0:
                pre = inp0[t]
            else:
                # Input projection of the previous layer's step-t output; it is
                # independent of this layer's h chain (off the critical path).
                pre = (jnp.dot(outs[l - 1][t], wih[l - 1],
                               preferred_element_type=jnp.float32)
                       + bias[l - 1])
            h_new = jnp.tanh(
                pre + jnp.dot(h[l], whh[l], preferred_element_type=jnp.float32))
            h[l] = h_new
            if l < L - 1:
                outs[l][t] = h_new
            else:
                # FC head applied as soon as a last-layer step is ready.
                if O == 1:
                    # VPU multiply + lane reduce instead of a (B,H)x(H,1) MXU
                    # matmul with a masked single-lane result.
                    fc_ref[t] = (jnp.sum(h_new * wfc_row, axis=-1, keepdims=True)
                                 + bfc)
                else:
                    fc_ref[t] = (lax.dot_general(
                        h_new, wfc_full, (((1,), (1,)), ((), ())),
                        preferred_element_type=jnp.float32) + bfc)

    for l in range(L):
        hn_ref[l] = h[l]


def rnn_forward(x, h0, params):
    """x: (B, T, 1) batch_first, h0: (L, B, H). Returns (output, hidden) matching
    the PyTorch module: output (B*T, output_size), hidden (L, B, H)."""
    wih0, wihr, whh, b, wfc, bfc = params
    B, T, I = x.shape
    L, _, H = h0.shape
    O = wfc.shape[0]
    assert I == 1 and wih0.shape == (1, H), "kernel specialised for input_size == 1"

    x_tb = jnp.transpose(x, (1, 0, 2)).astype(jnp.float32)          # (T, B, 1)

    vmem = pl.BlockSpec(memory_space=pltpu.MemorySpace.VMEM)
    hn, fc_tbo = pl.pallas_call(
        rnn_fc_kernel,
        out_shape=(jax.ShapeDtypeStruct((L, B, H), jnp.float32),
                   jax.ShapeDtypeStruct((T, B, O), jnp.float32)),
        in_specs=[vmem] * 8,
        out_specs=(vmem, vmem),
    )(x_tb, h0, wih0, wihr, whh, b, wfc, bfc)

    # r_out.contiguous().view(-1, H) in PyTorch is batch_first: row index = b*T + t.
    output = jnp.transpose(fc_tbo, (1, 0, 2)).reshape(B * T, O)
    return output, hn


def init_params(key, input_size, hidden_dim, n_layers, output_size):
    """Deterministic init matching the PyTorch shapes (uniform +-1/sqrt(H))."""
    k = 1.0 / (hidden_dim ** 0.5)
    keys = jax.random.split(key, 4 * n_layers + 2)
    wih0 = None
    wih_rest, whh_t, b_sum = [], [], []
    idx = 0
    for l in range(n_layers):
        in_dim = input_size if l == 0 else hidden_dim
        w_ih = jax.random.uniform(keys[idx], (hidden_dim, in_dim), minval=-k, maxval=k); idx += 1
        w_hh = jax.random.uniform(keys[idx], (hidden_dim, hidden_dim), minval=-k, maxval=k); idx += 1
        b_ih = jax.random.uniform(keys[idx], (hidden_dim,), minval=-k, maxval=k); idx += 1
        b_hh = jax.random.uniform(keys[idx], (hidden_dim,), minval=-k, maxval=k); idx += 1
        if l == 0:
            wih0 = w_ih.T.astype(jnp.float32)                       # (1, H)
        else:
            wih_rest.append(w_ih.T)
        whh_t.append(w_hh.T)
        b_sum.append((b_ih + b_hh)[None, :])
    w_fc = jax.random.uniform(keys[idx], (output_size, hidden_dim), minval=-k, maxval=k); idx += 1
    b_fc = jax.random.uniform(keys[idx], (output_size,), minval=-k, maxval=k)
    return (wih0,
            jnp.stack(wih_rest).astype(jnp.float32),
            jnp.stack(whh_t).astype(jnp.float32),
            jnp.stack(b_sum).astype(jnp.float32),
            w_fc.astype(jnp.float32),
            b_fc[None, :].astype(jnp.float32))


def ref_forward(x, h0, params):
    """Pure-JAX reference with identical math for validation."""
    wih0, wihr, whh, b, wfc, bfc = params
    B, T, I = x.shape
    L, _, H = h0.shape
    layer_in = x.astype(jnp.float32)                                # (B, T, in)
    hn = []
    for l in range(L):
        w_ih_t = wih0 if l == 0 else wihr[l - 1]
        h = h0[l]
        outs = []
        for t in range(T):
            h = jnp.tanh(layer_in[:, t, :] @ w_ih_t + h @ whh[l] + b[l])
            outs.append(h)
        layer_in = jnp.stack(outs, axis=1)
        hn.append(h)
    r_out = layer_in.reshape(-1, H)
    return r_out @ wfc.T + bfc, jnp.stack(hn)


if __name__ == "__main__":
    B, T, I, H, L, O = 8, 8, 1, 32, 3, 1   # small shapes consistent with the module
    key = jax.random.PRNGKey(0)
    kx, kp = jax.random.split(key)
    x = jax.random.normal(kx, (B, T, I), dtype=jnp.float32)
    # init_hidden in the PyTorch source returns an LSTM-style (h, c) tuple (a bug
    # for nn.RNN); nn.RNN expects a single (L, B, H) tensor, so use zeros of that.
    h0 = jnp.zeros((L, B, H), dtype=jnp.float32)

    params = init_params(kp, I, H, L, O)
    out, hn = rnn_forward(x, h0, params)
    jax.block_until_ready((out, hn))

    ref_out, ref_hn = ref_forward(x, h0, params)
    assert out.shape == (B * T, O) and hn.shape == (L, B, H)
    assert jnp.allclose(out, ref_out, atol=1e-4, rtol=1e-4), "fc output mismatch"
    assert jnp.allclose(hn, ref_hn, atol=1e-4, rtol=1e-4), "hidden state mismatch"
    print("KERNEL_OK")
</pallas_src>

<mosaic_0001>
module attributes {stable_mosaic.version = 11 : i64} {
  func.func @rnn_fc_kernel(%arg0: memref<8x8x1xf32, #tpu.memory_space<vmem>>, %arg1: memref<3x8x32xf32, #tpu.memory_space<vmem>>, %arg2: memref<1x32xf32, #tpu.memory_space<vmem>>, %arg3: memref<2x32x32xf32, #tpu.memory_space<vmem>>, %arg4: memref<3x32x32xf32, #tpu.memory_space<vmem>>, %arg5: memref<3x1x32xf32, #tpu.memory_space<vmem>>, %arg6: memref<1x32xf32, #tpu.memory_space<vmem>>, %arg7: memref<1x1xf32, #tpu.memory_space<vmem>>, %arg8: memref<3x8x32xf32, #tpu.memory_space<vmem>>, %arg9: memref<8x8x1xf32, #tpu.memory_space<vmem>>) attributes {dimension_semantics = [], scalar_prefetch = 0 : i64, scratch_operands = 0 : i64, tpu.core_type = #tpu.core_type<tc>} {
    %c0 = arith.constant 0 : index
    %c0_0 = arith.constant 0 : index
    %0 = vector.load %arg2[%c0, %c0_0] : memref<1x32xf32, #tpu.memory_space<vmem>>, vector<1x32xf32>
    %1 = vector.shape_cast %0 : vector<1x32xf32> to vector<1x1x32xf32>
    %c0_1 = arith.constant 0 : index
    %c0_2 = arith.constant 0 : index
    %c0_3 = arith.constant 0 : index
    %2 = vector.load %arg0[%c0_1, %c0_2, %c0_3] : memref<8x8x1xf32, #tpu.memory_space<vmem>>, vector<8x8x1xf32>
    %3 = vector.broadcast %2 : vector<8x8x1xf32> to vector<8x8x32xf32>
    %4 = vector.broadcast %1 : vector<1x1x32xf32> to vector<8x8x32xf32>
    %5 = arith.mulf %3, %4 : vector<8x8x32xf32>
    %c0_4 = arith.constant 0 : index
    %c0_5 = arith.constant 0 : index
    %c0_6 = arith.constant 0 : index
    %6 = vector.load %arg5[%c0_4, %c0_5, %c0_6] : memref<3x1x32xf32, #tpu.memory_space<vmem>>, vector<1x1x32xf32>
    %7 = vector.shape_cast %6 : vector<1x1x32xf32> to vector<1x32xf32>
    %8 = vector.shape_cast %7 : vector<1x32xf32> to vector<1x1x32xf32>
    %9 = vector.broadcast %8 : vector<1x1x32xf32> to vector<8x8x32xf32>
    %10 = arith.addf %5, %9 : vector<8x8x32xf32>
    %c0_7 = arith.constant 0 : index
    %c0_8 = arith.constant 0 : index
    %c0_9 = arith.constant 0 : index
    %11 = vector.load %arg4[%c0_7, %c0_8, %c0_9] : memref<3x32x32xf32, #tpu.memory_space<vmem>>, vector<1x32x32xf32>
    %12 = vector.shape_cast %11 : vector<1x32x32xf32> to vector<32x32xf32>
    %c1 = arith.constant 1 : index
    %c0_10 = arith.constant 0 : index
    %c0_11 = arith.constant 0 : index
    %13 = vector.load %arg4[%c1, %c0_10, %c0_11] : memref<3x32x32xf32, #tpu.memory_space<vmem>>, vector<1x32x32xf32>
    %14 = vector.shape_cast %13 : vector<1x32x32xf32> to vector<32x32xf32>
    %c2 = arith.constant 2 : index
    %c0_12 = arith.constant 0 : index
    %c0_13 = arith.constant 0 : index
    %15 = vector.load %arg4[%c2, %c0_12, %c0_13] : memref<3x32x32xf32, #tpu.memory_space<vmem>>, vector<1x32x32xf32>
    %16 = vector.shape_cast %15 : vector<1x32x32xf32> to vector<32x32xf32>
    %c0_14 = arith.constant 0 : index
    %c0_15 = arith.constant 0 : index
    %c0_16 = arith.constant 0 : index
    %17 = vector.load %arg3[%c0_14, %c0_15, %c0_16] : memref<2x32x32xf32, #tpu.memory_space<vmem>>, vector<1x32x32xf32>
    %18 = vector.shape_cast %17 : vector<1x32x32xf32> to vector<32x32xf32>
    %c1_17 = arith.constant 1 : index
    %c0_18 = arith.constant 0 : index
    %c0_19 = arith.constant 0 : index
    %19 = vector.load %arg3[%c1_17, %c0_18, %c0_19] : memref<2x32x32xf32, #tpu.memory_space<vmem>>, vector<1x32x32xf32>
    %20 = vector.shape_cast %19 : vector<1x32x32xf32> to vector<32x32xf32>
    %c1_20 = arith.constant 1 : index
    %c0_21 = arith.constant 0 : index
    %c0_22 = arith.constant 0 : index
    %21 = vector.load %arg5[%c1_20, %c0_21, %c0_22] : memref<3x1x32xf32, #tpu.memory_space<vmem>>, vector<1x1x32xf32>
    %22 = vector.shape_cast %21 : vector<1x1x32xf32> to vector<1x32xf32>
    %23 = vector.shape_cast %22 : vector<1x32xf32> to vector<1x32xf32>
    %24 = vector.broadcast %23 : vector<1x32xf32> to vector<8x32xf32>
    %c2_23 = arith.constant 2 : index
    %c0_24 = arith.constant 0 : index
    %c0_25 = arith.constant 0 : index
    %25 = vector.load %arg5[%c2_23, %c0_24, %c0_25] : memref<3x1x32xf32, #tpu.memory_space<vmem>>, vector<1x1x32xf32>
    %26 = vector.shape_cast %25 : vector<1x1x32xf32> to vector<1x32xf32>
    %27 = vector.shape_cast %26 : vector<1x32xf32> to vector<1x32xf32>
    %28 = vector.broadcast %27 : vector<1x32xf32> to vector<8x32xf32>
    %c0_26 = arith.constant 0 : index
    %c0_27 = arith.constant 0 : index
    %29 = vector.load %arg6[%c0_26, %c0_27] : memref<1x32xf32, #tpu.memory_space<vmem>>, vector<1x32xf32>
    %c0_28 = arith.constant 0 : index
    %c0_29 = arith.constant 0 : index
    %30 = vector.load %arg7[%c0_28, %c0_29] : memref<1x1xf32, #tpu.memory_space<vmem>>, vector<1x1xf32>
    %c0_30 = arith.constant 0 : index
    %c0_31 = arith.constant 0 : index
    %c0_32 = arith.constant 0 : index
    %31 = vector.load %arg1[%c0_30, %c0_31, %c0_32] : memref<3x8x32xf32, #tpu.memory_space<vmem>>, vector<1x8x32xf32>
    %32 = vector.shape_cast %31 : vector<1x8x32xf32> to vector<8x32xf32>
    %c1_33 = arith.constant 1 : index
    %c0_34 = arith.constant 0 : index
    %c0_35 = arith.constant 0 : index
    %33 = vector.load %arg1[%c1_33, %c0_34, %c0_35] : memref<3x8x32xf32, #tpu.memory_space<vmem>>, vector<1x8x32xf32>
    %34 = vector.shape_cast %33 : vector<1x8x32xf32> to vector<8x32xf32>
    %c2_36 = arith.constant 2 : index
    %c0_37 = arith.constant 0 : index
    %c0_38 = arith.constant 0 : index
    %35 = vector.load %arg1[%c2_36, %c0_37, %c0_38] : memref<3x8x32xf32, #tpu.memory_space<vmem>>, vector<1x8x32xf32>
    %36 = vector.shape_cast %35 : vector<1x8x32xf32> to vector<8x32xf32>
    %37 = vector.extract_strided_slice %10 {offsets = [0, 0, 0], sizes = [1, 8, 32], strides = [1, 1, 1]} : vector<8x8x32xf32> to vector<1x8x32xf32>
    %38 = vector.shape_cast %37 : vector<1x8x32xf32> to vector<8x32xf32>
    %cst = arith.constant dense<0.000000e+00> : vector<8x32xf32>
    %39 = tpu.matmul %32, %12, %cst {dimension_numbers = #tpu.dot_dimension_numbers<[1], [0], [0], [1], [0, 0, 1, 1], [], []>} : vector<8x32xf32>, vector<32x32xf32>, vector<8x32xf32> -> vector<8x32xf32>
    %40 = arith.addf %38, %39 : vector<8x32xf32>
    %41 = math.tanh %40 : vector<8x32xf32>
    %42 = vector.extract_strided_slice %10 {offsets = [1, 0, 0], sizes = [1, 8, 32], strides = [1, 1, 1]} : vector<8x8x32xf32> to vector<1x8x32xf32>
    %43 = vector.shape_cast %42 : vector<1x8x32xf32> to vector<8x32xf32>
    %cst_39 = arith.constant dense<0.000000e+00> : vector<8x32xf32>
    %44 = tpu.matmul %41, %12, %cst_39 {dimension_numbers = #tpu.dot_dimension_numbers<[1], [0], [0], [1], [0, 0, 1, 1], [], []>} : vector<8x32xf32>, vector<32x32xf32>, vector<8x32xf32> -> vector<8x32xf32>
    %45 = arith.addf %43, %44 : vector<8x32xf32>
    %46 = math.tanh %45 : vector<8x32xf32>
    %cst_40 = arith.constant dense<0.000000e+00> : vector<8x32xf32>
    %47 = tpu.matmul %41, %18, %cst_40 {dimension_numbers = #tpu.dot_dimension_numbers<[1], [0], [0], [1], [0, 0, 1, 1], [], []>} : vector<8x32xf32>, vector<32x32xf32>, vector<8x32xf32> -> vector<8x32xf32>
    %48 = arith.addf %47, %24 : vector<8x32xf32>
    %cst_41 = arith.constant dense<0.000000e+00> : vector<8x32xf32>
    %49 = tpu.matmul %34, %14, %cst_41 {dimension_numbers = #tpu.dot_dimension_numbers<[1], [0], [0], [1], [0, 0, 1, 1], [], []>} : vector<8x32xf32>, vector<32x32xf32>, vector<8x32xf32> -> vector<8x32xf32>
    %50 = arith.addf %48, %49 : vector<8x32xf32>
    %51 = math.tanh %50 : vector<8x32xf32>
    %52 = vector.extract_strided_slice %10 {offsets = [2, 0, 0], sizes = [1, 8, 32], strides = [1, 1, 1]} : vector<8x8x32xf32> to vector<1x8x32xf32>
    %53 = vector.shape_cast %52 : vector<1x8x32xf32> to vector<8x32xf32>
    %cst_42 = arith.constant dense<0.000000e+00> : vector<8x32xf32>
    %54 = tpu.matmul %46, %12, %cst_42 {dimension_numbers = #tpu.dot_dimension_numbers<[1], [0], [0], [1], [0, 0, 1, 1], [], []>} : vector<8x32xf32>, vector<32x32xf32>, vector<8x32xf32> -> vector<8x32xf32>
    %55 = arith.addf %53, %54 : vector<8x32xf32>
    %56 = math.tanh %55 : vector<8x32xf32>
    %cst_43 = arith.constant dense<0.000000e+00> : vector<8x32xf32>
    %57 = tpu.matmul %46, %18, %cst_43 {dimension_numbers = #tpu.dot_dimension_numbers<[1], [0], [0], [1], [0, 0, 1, 1], [], []>} : vector<8x32xf32>, vector<32x32xf32>, vector<8x32xf32> -> vector<8x32xf32>
    %58 = arith.addf %57, %24 : vector<8x32xf32>
    %cst_44 = arith.constant dense<0.000000e+00> : vector<8x32xf32>
    %59 = tpu.matmul %51, %14, %cst_44 {dimension_numbers = #tpu.dot_dimension_numbers<[1], [0], [0], [1], [0, 0, 1, 1], [], []>} : vector<8x32xf32>, vector<32x32xf32>, vector<8x32xf32> -> vector<8x32xf32>
    %60 = arith.addf %58, %59 : vector<8x32xf32>
    %61 = math.tanh %60 : vector<8x32xf32>
    %cst_45 = arith.constant dense<0.000000e+00> : vector<8x32xf32>
    %62 = tpu.matmul %51, %20, %cst_45 {dimension_numbers = #tpu.dot_dimension_numbers<[1], [0], [0], [1], [0, 0, 1, 1], [], []>} : vector<8x32xf32>, vector<32x32xf32>, vector<8x32xf32> -> vector<8x32xf32>
    %63 = arith.addf %62, %28 : vector<8x32xf32>
    %cst_46 = arith.constant dense<0.000000e+00> : vector<8x32xf32>
    %64 = tpu.matmul %36, %16, %cst_46 {dimension_numbers = #tpu.dot_dimension_numbers<[1], [0], [0], [1], [0, 0, 1, 1], [], []>} : vector<8x32xf32>, vector<32x32xf32>, vector<8x32xf32> -> vector<8x32xf32>
    %65 = arith.addf %63, %64 : vector<8x32xf32>
    %66 = math.tanh %65 : vector<8x32xf32>
    %67 = vector.broadcast %29 : vector<1x32xf32> to vector<8x32xf32>
    %68 = arith.mulf %66, %67 : vector<8x32xf32>
    %cst_47 = arith.constant dense<0.000000e+00> : vector<8xf32>
    %69 = vector.multi_reduction <add>, %68, %cst_47 [1] : vector<8x32xf32> to vector<8xf32>
    %70 = vector.shape_cast %69 : vector<8xf32> to vector<8x1xf32>
    %71 = vector.broadcast %30 : vector<1x1xf32> to vector<8x1xf32>
    %72 = arith.addf %70, %71 : vector<8x1xf32>
    %c0_48 = arith.constant 0 : index
    %c0_49 = arith.constant 0 : index
    %c0_50 = arith.constant 0 : index
    %73 = vector.load %arg9[%c0_48, %c0_49, %c0_50] : memref<8x8x1xf32, #tpu.memory_space<vmem>>, vector<1x8x1xf32>
    %74 = vector.shape_cast %73 : vector<1x8x1xf32> to vector<8x1xf32>
    %75 = vector.shape_cast %72 : vector<8x1xf32> to vector<1x8x1xf32>
    tpu.vector_store %arg9[%c0_48, %c0_49, %c0_50], %75 {strides = array<i32>} : memref<8x8x1xf32, #tpu.memory_space<vmem>>, vector<1x8x1xf32>,
    %76 = vector.extract_strided_slice %10 {offsets = [3, 0, 0], sizes = [1, 8, 32], strides = [1, 1, 1]} : vector<8x8x32xf32> to vector<1x8x32xf32>
    %77 = vector.shape_cast %76 : vector<1x8x32xf32> to vector<8x32xf32>
    %cst_51 = arith.constant dense<0.000000e+00> : vector<8x32xf32>
    %78 = tpu.matmul %56, %12, %cst_51 {dimension_numbers = #tpu.dot_dimension_numbers<[1], [0], [0], [1], [0, 0, 1, 1], [], []>} : vector<8x32xf32>, vector<32x32xf32>, vector<8x32xf32> -> vector<8x32xf32>
    %79 = arith.addf %77, %78 : vector<8x32xf32>
    %80 = math.tanh %79 : vector<8x32xf32>
    %cst_52 = arith.constant dense<0.000000e+00> : vector<8x32xf32>
    %81 = tpu.matmul %56, %18, %cst_52 {dimension_numbers = #tpu.dot_dimension_numbers<[1], [0], [0], [1], [0, 0, 1, 1], [], []>} : vector<8x32xf32>, vector<32x32xf32>, vector<8x32xf32> -> vector<8x32xf32>
    %82 = arith.addf %81, %24 : vector<8x32xf32>
    %cst_53 = arith.constant dense<0.000000e+00> : vector<8x32xf32>
    %83 = tpu.matmul %61, %14, %cst_53 {dimension_numbers = #tpu.dot_dimension_numbers<[1], [0], [0], [1], [0, 0, 1, 1], [], []>} : vector<8x32xf32>, vector<32x32xf32>, vector<8x32xf32> -> vector<8x32xf32>
    %84 = arith.addf %82, %83 : vector<8x32xf32>
    %85 = math.tanh %84 : vector<8x32xf32>
    %cst_54 = arith.constant dense<0.000000e+00> : vector<8x32xf32>
    %86 = tpu.matmul %61, %20, %cst_54 {dimension_numbers = #tpu.dot_dimension_numbers<[1], [0], [0], [1], [0, 0, 1, 1], [], []>} : vector<8x32xf32>, vector<32x32xf32>, vector<8x32xf32> -> vector<8x32xf32>
    %87 = arith.addf %86, %28 : vector<8x32xf32>
    %cst_55 = arith.constant dense<0.000000e+00> : vector<8x32xf32>
    %88 = tpu.matmul %66, %16, %cst_55 {dimension_numbers = #tpu.dot_dimension_numbers<[1], [0], [0], [1], [0, 0, 1, 1], [], []>} : vector<8x32xf32>, vector<32x32xf32>, vector<8x32xf32> -> vector<8x32xf32>
    %89 = arith.addf %87, %88 : vector<8x32xf32>
    %90 = math.tanh %89 : vector<8x32xf32>
    %91 = vector.broadcast %29 : vector<1x32xf32> to vector<8x32xf32>
    %92 = arith.mulf %90, %91 : vector<8x32xf32>
    %cst_56 = arith.constant dense<0.000000e+00> : vector<8xf32>
    %93 = vector.multi_reduction <add>, %92, %cst_56 [1] : vector<8x32xf32> to vector<8xf32>
    %94 = vector.shape_cast %93 : vector<8xf32> to vector<8x1xf32>
    %95 = vector.broadcast %30 : vector<1x1xf32> to vector<8x1xf32>
    %96 = arith.addf %94, %95 : vector<8x1xf32>
    %c1_57 = arith.constant 1 : index
    %c0_58 = arith.constant 0 : index
    %c0_59 = arith.constant 0 : index
    %97 = vector.load %arg9[%c1_57, %c0_58, %c0_59] : memref<8x8x1xf32, #tpu.memory_space<vmem>>, vector<1x8x1xf32>
    %98 = vector.shape_cast %97 : vector<1x8x1xf32> to vector<8x1xf32>
    %99 = vector.shape_cast %96 : vector<8x1xf32> to vector<1x8x1xf32>
    tpu.vector_store %arg9[%c1_57, %c0_58, %c0_59], %99 {strides = array<i32>} : memref<8x8x1xf32, #tpu.memory_space<vmem>>, vector<1x8x1xf32>,
    %100 = vector.extract_strided_slice %10 {offsets = [4, 0, 0], sizes = [1, 8, 32], strides = [1, 1, 1]} : vector<8x8x32xf32> to vector<1x8x32xf32>
    %101 = vector.shape_cast %100 : vector<1x8x32xf32> to vector<8x32xf32>
    %cst_60 = arith.constant dense<0.000000e+00> : vector<8x32xf32>
    %102 = tpu.matmul %80, %12, %cst_60 {dimension_numbers = #tpu.dot_dimension_numbers<[1], [0], [0], [1], [0, 0, 1, 1], [], []>} : vector<8x32xf32>, vector<32x32xf32>, vector<8x32xf32> -> vector<8x32xf32>
    %103 = arith.addf %101, %102 : vector<8x32xf32>
    %104 = math.tanh %103 : vector<8x32xf32>
    %cst_61 = arith.constant dense<0.000000e+00> : vector<8x32xf32>
    %105 = tpu.matmul %80, %18, %cst_61 {dimension_numbers = #tpu.dot_dimension_numbers<[1], [0], [0], [1], [0, 0, 1, 1], [], []>} : vector<8x32xf32>, vector<32x32xf32>, vector<8x32xf32> -> vector<8x32xf32>
    %106 = arith.addf %105, %24 : vector<8x32xf32>
    %cst_62 = arith.constant dense<0.000000e+00> : vector<8x32xf32>
    %107 = tpu.matmul %85, %14, %cst_62 {dimension_numbers = #tpu.dot_dimension_numbers<[1], [0], [0], [1], [0, 0, 1, 1], [], []>} : vector<8x32xf32>, vector<32x32xf32>, vector<8x32xf32> -> vector<8x32xf32>
    %108 = arith.addf %106, %107 : vector<8x32xf32>
    %109 = math.tanh %108 : vector<8x32xf32>
    %cst_63 = arith.constant dense<0.000000e+00> : vector<8x32xf32>
    %110 = tpu.matmul %85, %20, %cst_63 {dimension_numbers = #tpu.dot_dimension_numbers<[1], [0], [0], [1], [0, 0, 1, 1], [], []>} : vector<8x32xf32>, vector<32x32xf32>, vector<8x32xf32> -> vector<8x32xf32>
    %111 = arith.addf %110, %28 : vector<8x32xf32>
    %cst_64 = arith.constant dense<0.000000e+00> : vector<8x32xf32>
    %112 = tpu.matmul %90, %16, %cst_64 {dimension_numbers = #tpu.dot_dimension_numbers<[1], [0], [0], [1], [0, 0, 1, 1], [], []>} : vector<8x32xf32>, vector<32x32xf32>, vector<8x32xf32> -> vector<8x32xf32>
    %113 = arith.addf %111, %112 : vector<8x32xf32>
    %114 = math.tanh %113 : vector<8x32xf32>
    %115 = vector.broadcast %29 : vector<1x32xf32> to vector<8x32xf32>
    %116 = arith.mulf %114, %115 : vector<8x32xf32>
    %cst_65 = arith.constant dense<0.000000e+00> : vector<8xf32>
    %117 = vector.multi_reduction <add>, %116, %cst_65 [1] : vector<8x32xf32> to vector<8xf32>
    %118 = vector.shape_cast %117 : vector<8xf32> to vector<8x1xf32>
    %119 = vector.broadcast %30 : vector<1x1xf32> to vector<8x1xf32>
    %120 = arith.addf %118, %119 : vector<8x1xf32>
    %c2_66 = arith.constant 2 : index
    %c0_67 = arith.constant 0 : index
    %c0_68 = arith.constant 0 : index
    %121 = vector.load %arg9[%c2_66, %c0_67, %c0_68] : memref<8x8x1xf32, #tpu.memory_space<vmem>>, vector<1x8x1xf32>
    %122 = vector.shape_cast %121 : vector<1x8x1xf32> to vector<8x1xf32>
    %123 = vector.shape_cast %120 : vector<8x1xf32> to vector<1x8x1xf32>
    tpu.vector_store %arg9[%c2_66, %c0_67, %c0_68], %123 {strides = array<i32>} : memref<8x8x1xf32, #tpu.memory_space<vmem>>, vector<1x8x1xf32>,
    %124 = vector.extract_strided_slice %10 {offsets = [5, 0, 0], sizes = [1, 8, 32], strides = [1, 1, 1]} : vector<8x8x32xf32> to vector<1x8x32xf32>
    %125 = vector.shape_cast %124 : vector<1x8x32xf32> to vector<8x32xf32>
    %cst_69 = arith.constant dense<0.000000e+00> : vector<8x32xf32>
    %126 = tpu.matmul %104, %12, %cst_69 {dimension_numbers = #tpu.dot_dimension_numbers<[1], [0], [0], [1], [0, 0, 1, 1], [], []>} : vector<8x32xf32>, vector<32x32xf32>, vector<8x32xf32> -> vector<8x32xf32>
    %127 = arith.addf %125, %126 : vector<8x32xf32>
    %128 = math.tanh %127 : vector<8x32xf32>
    %cst_70 = arith.constant dense<0.000000e+00> : vector<8x32xf32>
    %129 = tpu.matmul %104, %18, %cst_70 {dimension_numbers = #tpu.dot_dimension_numbers<[1], [0], [0], [1], [0, 0, 1, 1], [], []>} : vector<8x32xf32>, vector<32x32xf32>, vector<8x32xf32> -> vector<8x32xf32>
    %130 = arith.addf %129, %24 : vector<8x32xf32>
    %cst_71 = arith.constant dense<0.000000e+00> : vector<8x32xf32>
    %131 = tpu.matmul %109, %14, %cst_71 {dimension_numbers = #tpu.dot_dimension_numbers<[1], [0], [0], [1], [0, 0, 1, 1], [], []>} : vector<8x32xf32>, vector<32x32xf32>, vector<8x32xf32> -> vector<8x32xf32>
    %132 = arith.addf %130, %131 : vector<8x32xf32>
    %133 = math.tanh %132 : vector<8x32xf32>
    %cst_72 = arith.constant dense<0.000000e+00> : vector<8x32xf32>
    %134 = tpu.matmul %109, %20, %cst_72 {dimension_numbers = #tpu.dot_dimension_numbers<[1], [0], [0], [1], [0, 0, 1, 1], [], []>} : vector<8x32xf32>, vector<32x32xf32>, vector<8x32xf32> -> vector<8x32xf32>
    %135 = arith.addf %134, %28 : vector<8x32xf32>
    %cst_73 = arith.constant dense<0.000000e+00> : vector<8x32xf32>
    %136 = tpu.matmul %114, %16, %cst_73 {dimension_numbers = #tpu.dot_dimension_numbers<[1], [0], [0], [1], [0, 0, 1, 1], [], []>} : vector<8x32xf32>, vector<32x32xf32>, vector<8x32xf32> -> vector<8x32xf32>
    %137 = arith.addf %135, %136 : vector<8x32xf32>
    %138 = math.tanh %137 : vector<8x32xf32>
    %139 = vector.broadcast %29 : vector<1x32xf32> to vector<8x32xf32>
    %140 = arith.mulf %138, %139 : vector<8x32xf32>
    %cst_74 = arith.constant dense<0.000000e+00> : vector<8xf32>
    %141 = vector.multi_reduction <add>, %140, %cst_74 [1] : vector<8x32xf32> to vector<8xf32>
    %142 = vector.shape_cast %141 : vector<8xf32> to vector<8x1xf32>
    %143 = vector.broadcast %30 : vector<1x1xf32> to vector<8x1xf32>
    %144 = arith.addf %142, %143 : vector<8x1xf32>
    %c3 = arith.constant 3 : index
    %c0_75 = arith.constant 0 : index
    %c0_76 = arith.constant 0 : index
    %145 = vector.load %arg9[%c3, %c0_75, %c0_76] : memref<8x8x1xf32, #tpu.memory_space<vmem>>, vector<1x8x1xf32>
    %146 = vector.shape_cast %145 : vector<1x8x1xf32> to vector<8x1xf32>
    %147 = vector.shape_cast %144 : vector<8x1xf32> to vector<1x8x1xf32>
    tpu.vector_store %arg9[%c3, %c0_75, %c0_76], %147 {strides = array<i32>} : memref<8x8x1xf32, #tpu.memory_space<vmem>>, vector<1x8x1xf32>,
    %148 = vector.extract_strided_slice %10 {offsets = [6, 0, 0], sizes = [1, 8, 32], strides = [1, 1, 1]} : vector<8x8x32xf32> to vector<1x8x32xf32>
    %149 = vector.shape_cast %148 : vector<1x8x32xf32> to vector<8x32xf32>
    %cst_77 = arith.constant dense<0.000000e+00> : vector<8x32xf32>
    %150 = tpu.matmul %128, %12, %cst_77 {dimension_numbers = #tpu.dot_dimension_numbers<[1], [0], [0], [1], [0, 0, 1, 1], [], []>} : vector<8x32xf32>, vector<32x32xf32>, vector<8x32xf32> -> vector<8x32xf32>
    %151 = arith.addf %149, %150 : vector<8x32xf32>
    %152 = math.tanh %151 : vector<8x32xf32>
    %cst_78 = arith.constant dense<0.000000e+00> : vector<8x32xf32>
    %153 = tpu.matmul %128, %18, %cst_78 {dimension_numbers = #tpu.dot_dimension_numbers<[1], [0], [0], [1], [0, 0, 1, 1], [], []>} : vector<8x32xf32>, vector<32x32xf32>, vector<8x32xf32> -> vector<8x32xf32>
    %154 = arith.addf %153, %24 : vector<8x32xf32>
    %cst_79 = arith.constant dense<0.000000e+00> : vector<8x32xf32>
    %155 = tpu.matmul %133, %14, %cst_79 {dimension_numbers = #tpu.dot_dimension_numbers<[1], [0], [0], [1], [0, 0, 1, 1], [], []>} : vector<8x32xf32>, vector<32x32xf32>, vector<8x32xf32> -> vector<8x32xf32>
    %156 = arith.addf %154, %155 : vector<8x32xf32>
    %157 = math.tanh %156 : vector<8x32xf32>
    %cst_80 = arith.constant dense<0.000000e+00> : vector<8x32xf32>
    %158 = tpu.matmul %133, %20, %cst_80 {dimension_numbers = #tpu.dot_dimension_numbers<[1], [0], [0], [1], [0, 0, 1, 1], [], []>} : vector<8x32xf32>, vector<32x32xf32>, vector<8x32xf32> -> vector<8x32xf32>
    %159 = arith.addf %158, %28 : vector<8x32xf32>
    %cst_81 = arith.constant dense<0.000000e+00> : vector<8x32xf32>
    %160 = tpu.matmul %138, %16, %cst_81 {dimension_numbers = #tpu.dot_dimension_numbers<[1], [0], [0], [1], [0, 0, 1, 1], [], []>} : vector<8x32xf32>, vector<32x32xf32>, vector<8x32xf32> -> vector<8x32xf32>
    %161 = arith.addf %159, %160 : vector<8x32xf32>
    %162 = math.tanh %161 : vector<8x32xf32>
    %163 = vector.broadcast %29 : vector<1x32xf32> to vector<8x32xf32>
    %164 = arith.mulf %162, %163 : vector<8x32xf32>
    %cst_82 = arith.constant dense<0.000000e+00> : vector<8xf32>
    %165 = vector.multi_reduction <add>, %164, %cst_82 [1] : vector<8x32xf32> to vector<8xf32>
    %166 = vector.shape_cast %165 : vector<8xf32> to vector<8x1xf32>
    %167 = vector.broadcast %30 : vector<1x1xf32> to vector<8x1xf32>
    %168 = arith.addf %166, %167 : vector<8x1xf32>
    %c4 = arith.constant 4 : index
    %c0_83 = arith.constant 0 : index
    %c0_84 = arith.constant 0 : index
    %169 = vector.load %arg9[%c4, %c0_83, %c0_84] : memref<8x8x1xf32, #tpu.memory_space<vmem>>, vector<1x8x1xf32>
    %170 = vector.shape_cast %169 : vector<1x8x1xf32> to vector<8x1xf32>
    %171 = vector.shape_cast %168 : vector<8x1xf32> to vector<1x8x1xf32>
    tpu.vector_store %arg9[%c4, %c0_83, %c0_84], %171 {strides = array<i32>} : memref<8x8x1xf32, #tpu.memory_space<vmem>>, vector<1x8x1xf32>,
    %172 = vector.extract_strided_slice %10 {offsets = [7, 0, 0], sizes = [1, 8, 32], strides = [1, 1, 1]} : vector<8x8x32xf32> to vector<1x8x32xf32>
    %173 = vector.shape_cast %172 : vector<1x8x32xf32> to vector<8x32xf32>
    %cst_85 = arith.constant dense<0.000000e+00> : vector<8x32xf32>
    %174 = tpu.matmul %152, %12, %cst_85 {dimension_numbers = #tpu.dot_dimension_numbers<[1], [0], [0], [1], [0, 0, 1, 1], [], []>} : vector<8x32xf32>, vector<32x32xf32>, vector<8x32xf32> -> vector<8x32xf32>
    %175 = arith.addf %173, %174 : vector<8x32xf32>
    %176 = math.tanh %175 : vector<8x32xf32>
    %cst_86 = arith.constant dense<0.000000e+00> : vector<8x32xf32>
    %177 = tpu.matmul %152, %18, %cst_86 {dimension_numbers = #tpu.dot_dimension_numbers<[1], [0], [0], [1], [0, 0, 1, 1], [], []>} : vector<8x32xf32>, vector<32x32xf32>, vector<8x32xf32> -> vector<8x32xf32>
    %178 = arith.addf %177, %24 : vector<8x32xf32>
    %cst_87 = arith.constant dense<0.000000e+00> : vector<8x32xf32>
    %179 = tpu.matmul %157, %14, %cst_87 {dimension_numbers = #tpu.dot_dimension_numbers<[1], [0], [0], [1], [0, 0, 1, 1], [], []>} : vector<8x32xf32>, vector<32x32xf32>, vector<8x32xf32> -> vector<8x32xf32>
    %180 = arith.addf %178, %179 : vector<8x32xf32>
    %181 = math.tanh %180 : vector<8x32xf32>
    %cst_88 = arith.constant dense<0.000000e+00> : vector<8x32xf32>
    %182 = tpu.matmul %157, %20, %cst_88 {dimension_numbers = #tpu.dot_dimension_numbers<[1], [0], [0], [1], [0, 0, 1, 1], [], []>} : vector<8x32xf32>, vector<32x32xf32>, vector<8x32xf32> -> vector<8x32xf32>
    %183 = arith.addf %182, %28 : vector<8x32xf32>
    %cst_89 = arith.constant dense<0.000000e+00> : vector<8x32xf32>
    %184 = tpu.matmul %162, %16, %cst_89 {dimension_numbers = #tpu.dot_dimension_numbers<[1], [0], [0], [1], [0, 0, 1, 1], [], []>} : vector<8x32xf32>, vector<32x32xf32>, vector<8x32xf32> -> vector<8x32xf32>
    %185 = arith.addf %183, %184 : vector<8x32xf32>
    %186 = math.tanh %185 : vector<8x32xf32>
    %187 = vector.broadcast %29 : vector<1x32xf32> to vector<8x32xf32>
    %188 = arith.mulf %186, %187 : vector<8x32xf32>
    %cst_90 = arith.constant dense<0.000000e+00> : vector<8xf32>
    %189 = vector.multi_reduction <add>, %188, %cst_90 [1] : vector<8x32xf32> to vector<8xf32>
    %190 = vector.shape_cast %189 : vector<8xf32> to vector<8x1xf32>
    %191 = vector.broadcast %30 : vector<1x1xf32> to vector<8x1xf32>
    %192 = arith.addf %190, %191 : vector<8x1xf32>
    %c5 = arith.constant 5 : index
    %c0_91 = arith.constant 0 : index
    %c0_92 = arith.constant 0 : index
    %193 = vector.load %arg9[%c5, %c0_91, %c0_92] : memref<8x8x1xf32, #tpu.memory_space<vmem>>, vector<1x8x1xf32>
    %194 = vector.shape_cast %193 : vector<1x8x1xf32> to vector<8x1xf32>
    %195 = vector.shape_cast %192 : vector<8x1xf32> to vector<1x8x1xf32>
    tpu.vector_store %arg9[%c5, %c0_91, %c0_92], %195 {strides = array<i32>} : memref<8x8x1xf32, #tpu.memory_space<vmem>>, vector<1x8x1xf32>,
    %cst_93 = arith.constant dense<0.000000e+00> : vector<8x32xf32>
    %196 = tpu.matmul %176, %18, %cst_93 {dimension_numbers = #tpu.dot_dimension_numbers<[1], [0], [0], [1], [0, 0, 1, 1], [], []>} : vector<8x32xf32>, vector<32x32xf32>, vector<8x32xf32> -> vector<8x32xf32>
    %197 = arith.addf %196, %24 : vector<8x32xf32>
    %cst_94 = arith.constant dense<0.000000e+00> : vector<8x32xf32>
    %198 = tpu.matmul %181, %14, %cst_94 {dimension_numbers = #tpu.dot_dimension_numbers<[1], [0], [0], [1], [0, 0, 1, 1], [], []>} : vector<8x32xf32>, vector<32x32xf32>, vector<8x32xf32> -> vector<8x32xf32>
    %199 = arith.addf %197, %198 : vector<8x32xf32>
    %200 = math.tanh %199 : vector<8x32xf32>
    %cst_95 = arith.constant dense<0.000000e+00> : vector<8x32xf32>
    %201 = tpu.matmul %181, %20, %cst_95 {dimension_numbers = #tpu.dot_dimension_numbers<[1], [0], [0], [1], [0, 0, 1, 1], [], []>} : vector<8x32xf32>, vector<32x32xf32>, vector<8x32xf32> -> vector<8x32xf32>
    %202 = arith.addf %201, %28 : vector<8x32xf32>
    %cst_96 = arith.constant dense<0.000000e+00> : vector<8x32xf32>
    %203 = tpu.matmul %186, %16, %cst_96 {dimension_numbers = #tpu.dot_dimension_numbers<[1], [0], [0], [1], [0, 0, 1, 1], [], []>} : vector<8x32xf32>, vector<32x32xf32>, vector<8x32xf32> -> vector<8x32xf32>
    %204 = arith.addf %202, %203 : vector<8x32xf32>
    %205 = math.tanh %204 : vector<8x32xf32>
    %206 = vector.broadcast %29 : vector<1x32xf32> to vector<8x32xf32>
    %207 = arith.mulf %205, %206 : vector<8x32xf32>
    %cst_97 = arith.constant dense<0.000000e+00> : vector<8xf32>
    %208 = vector.multi_reduction <add>, %207, %cst_97 [1] : vector<8x32xf32> to vector<8xf32>
    %209 = vector.shape_cast %208 : vector<8xf32> to vector<8x1xf32>
    %210 = vector.broadcast %30 : vector<1x1xf32> to vector<8x1xf32>
    %211 = arith.addf %209, %210 : vector<8x1xf32>
    %c6 = arith.constant 6 : index
    %c0_98 = arith.constant 0 : index
    %c0_99 = arith.constant 0 : index
    %212 = vector.load %arg9[%c6, %c0_98, %c0_99] : memref<8x8x1xf32, #tpu.memory_space<vmem>>, vector<1x8x1xf32>
    %213 = vector.shape_cast %212 : vector<1x8x1xf32> to vector<8x1xf32>
    %214 = vector.shape_cast %211 : vector<8x1xf32> to vector<1x8x1xf32>
    tpu.vector_store %arg9[%c6, %c0_98, %c0_99], %214 {strides = array<i32>} : memref<8x8x1xf32, #tpu.memory_space<vmem>>, vector<1x8x1xf32>,
    %cst_100 = arith.constant dense<0.000000e+00> : vector<8x32xf32>
    %215 = tpu.matmul %200, %20, %cst_100 {dimension_numbers = #tpu.dot_dimension_numbers<[1], [0], [0], [1], [0, 0, 1, 1], [], []>} : vector<8x32xf32>, vector<32x32xf32>, vector<8x32xf32> -> vector<8x32xf32>
    %216 = arith.addf %215, %28 : vector<8x32xf32>
    %cst_101 = arith.constant dense<0.000000e+00> : vector<8x32xf32>
    %217 = tpu.matmul %205, %16, %cst_101 {dimension_numbers = #tpu.dot_dimension_numbers<[1], [0], [0], [1], [0, 0, 1, 1], [], []>} : vector<8x32xf32>, vector<32x32xf32>, vector<8x32xf32> -> vector<8x32xf32>
    %218 = arith.addf %216, %217 : vector<8x32xf32>
    %219 = math.tanh %218 : vector<8x32xf32>
    %220 = vector.broadcast %29 : vector<1x32xf32> to vector<8x32xf32>
    %221 = arith.mulf %219, %220 : vector<8x32xf32>
    %cst_102 = arith.constant dense<0.000000e+00> : vector<8xf32>
    %222 = vector.multi_reduction <add>, %221, %cst_102 [1] : vector<8x32xf32> to vector<8xf32>
    %223 = vector.shape_cast %222 : vector<8xf32> to vector<8x1xf32>
    %224 = vector.broadcast %30 : vector<1x1xf32> to vector<8x1xf32>
    %225 = arith.addf %223, %224 : vector<8x1xf32>
    %c7 = arith.constant 7 : index
    %c0_103 = arith.constant 0 : index
    %c0_104 = arith.constant 0 : index
    %226 = vector.load %arg9[%c7, %c0_103, %c0_104] : memref<8x8x1xf32, #tpu.memory_space<vmem>>, vector<1x8x1xf32>
    %227 = vector.shape_cast %226 : vector<1x8x1xf32> to vector<8x1xf32>
    %228 = vector.shape_cast %225 : vector<8x1xf32> to vector<1x8x1xf32>
    tpu.vector_store %arg9[%c7, %c0_103, %c0_104], %228 {strides = array<i32>} : memref<8x8x1xf32, #tpu.memory_space<vmem>>, vector<1x8x1xf32>,
    %c0_105 = arith.constant 0 : index
    %c0_106 = arith.constant 0 : index
    %c0_107 = arith.constant 0 : index
    %229 = vector.load %arg8[%c0_105, %c0_106, %c0_107] : memref<3x8x32xf32, #tpu.memory_space<vmem>>, vector<1x8x32xf32>
    %230 = vector.shape_cast %229 : vector<1x8x32xf32> to vector<8x32xf32>
    %231 = vector.shape_cast %176 : vector<8x32xf32> to vector<1x8x32xf32>
    tpu.vector_store %arg8[%c0_105, %c0_106, %c0_107], %231 {strides = array<i32>} : memref<3x8x32xf32, #tpu.memory_space<vmem>>, vector<1x8x32xf32>,
    %c1_108 = arith.constant 1 : index
    %c0_109 = arith.constant 0 : index
    %c0_110 = arith.constant 0 : index
    %232 = vector.load %arg8[%c1_108, %c0_109, %c0_110] : memref<3x8x32xf32, #tpu.memory_space<vmem>>, vector<1x8x32xf32>
    %233 = vector.shape_cast %232 : vector<1x8x32xf32> to vector<8x32xf32>
    %234 = vector.shape_cast %200 : vector<8x32xf32> to vector<1x8x32xf32>
    tpu.vector_store %arg8[%c1_108, %c0_109, %c0_110], %234 {strides = array<i32>} : memref<3x8x32xf32, #tpu.memory_space<vmem>>, vector<1x8x32xf32>,
    %c2_111 = arith.constant 2 : index
    %c0_112 = arith.constant 0 : index
    %c0_113 = arith.constant 0 : index
    %235 = vector.load %arg8[%c2_111, %c0_112, %c0_113] : memref<3x8x32xf32, #tpu.memory_space<vmem>>, vector<1x8x32xf32>
    %236 = vector.shape_cast %235 : vector<1x8x32xf32> to vector<8x32xf32>
    %237 = vector.shape_cast %219 : vector<8x32xf32> to vector<1x8x32xf32>
    tpu.vector_store %arg8[%c2_111, %c0_112, %c0_113], %237 {strides = array<i32>} : memref<3x8x32xf32, #tpu.memory_space<vmem>>, vector<1x8x32xf32>,
    return
  }
}

</mosaic_0001>

<bundles_post_ra>
// kernel: tpu_custom_call.1
= control target key start
LH: loop header
LB: loop body
LE: loop exit
PB: predicated region body
PF: predicated region fallthrough
CT: control target
= control target key end

     0   :  { %s4789_s0 = inlined_call_operand.vmem [shape: f32[8,8,1], index: 0, kind: input, shape index: {}]   ;;  %s4790_s1 = inlined_call_operand.hbm [shape: f32[3,8,32], index: 1, kind: input, shape index: {}]   ;;  %s4791_s2 = inlined_call_operand.vmem [shape: f32[1,32], index: 2, kind: input, shape index: {}]   ;;  %s4792_s3 = inlined_call_operand.vmem [shape: f32[2,32,32], index: 3, kind: input, shape index: {}]   ;;  %s4793_s4 = inlined_call_operand.hbm [shape: f32[3,32,32], index: 4, kind: input, shape index: {}]   ;;  %s4794_s5 = inlined_call_operand.vmem [shape: f32[3,1,32], index: 5, kind: input, shape index: {}]   ;;  %s4795_s6 = inlined_call_operand.vmem [shape: f32[1,32], index: 6, kind: input, shape index: {}]   ;;  %s4796_s7 = inlined_call_operand.<no memory space> [shape: f32[1,1], index: 7, kind: input, shape index: {}]   ;;  %s4797_s8 = inlined_call_operand.hbm [shape: f32[3,8,32], index: 8, kind: output, shape index: {0}]   ;;  %s4798_s9 = inlined_call_operand.vmem [shape: f32[8,8,1], index: 9, kind: output, shape index: {1}]  }
   0x1   :  { %v15_v0 = vstv %s4796_s7 }
   0x2   :  { %16 = vst [vmem:[#allocation2] sm:$0x1] %v15_v0 }
   0x3   :  { %17 = vsyncpa [#allocation4], 0 }
   0x4   :  { %18 = vsyncpa [#allocation7], 0 }
   0x5   :  { %19 = vsyncpa [#allocation5], 0  ;;  %s4039_s11 = smov [#allocation3]  }
   0x6   :  { %s27_s12 = sshll.u32 %s4039_s11, 4  ;;  %s28_s12 = int_to_ptr.vmem [resolvable:$true] %s27_s12 }
   0x7   :  { %s3981_s13 = scalar_lea.vmem %s28_s12, 384  ;;  %p3986_p1 = scmp.lt.s32.totalorder %s28_s12, %s28_s12 }
   0x8   :  { %p3982_p0 = scmp.ne.s32.totalorder %s28_s12, %s3981_s13  ;;  %p3987_p2 = scmp.lt.s32.totalorder %s3981_s13, %s3981_s13 }
   0xa   :  { %p3988_p3 = por %p3987_p2, %p3986_p1 }
   0xc   :  { %p3989_p4 = pnand %p3988_p3, %p3982_p0 }
   0xe   :  { %3992 = shalt.err (!%p3989_p4)
}
   0xf   :  { %s4040_s14 = smov 128   ;;  %s4041_s15 = smov 8  }
  0x10   :  { %33 = dma.hbm_to_vmem [thread:$0]  %s4790_s1, 384, %s28_s12, [#allocation4], %s4040_s14, %s4040_s14, %s4041_s15  }
  0x11   :  { %s4042_s17 = smov [#allocation6]  }
  0x12   :  { %s43_s18 = sshll.u32 %s4042_s17, 4  ;;  %s44_s18 = int_to_ptr.vmem [resolvable:$true] %s43_s18 }
  0x13   :  { %s4001_s19 = scalar_lea.vmem %s44_s18, 1536  ;;  %p4006_p6 = scmp.lt.s32.totalorder %s44_s18, %s44_s18 }
  0x14   :  { %p4002_p5 = scmp.ne.s32.totalorder %s44_s18, %s4001_s19  ;;  %p4007_p7 = scmp.lt.s32.totalorder %s4001_s19, %s4001_s19 }
  0x16   :  { %p4008_p8 = por %p4007_p7, %p4006_p6 }
  0x18   :  { %p4009_p9 = pnand %p4008_p8, %p4002_p5 }
  0x1a   :  { %4012 = shalt.err (!%p4009_p9)
}
  0x1b   :  { %49 = dma.hbm_to_vmem [thread:$0]  %s4793_s4, 1536, %s44_s18, [#allocation7], %s4040_s14, %s4040_s14, %s4041_s15  }
  0x1c   :  { %4033 = dma.done.wait [#allocation4], 384  }
  0x1d   :  { %4034 = vsyncadd [#allocation4], 4294966912 }
  0x1e   :  { %4035 = dma.done.wait [#allocation7], 1536  }
  0x1f   :  { %4036 = vsyncadd [#allocation7], 4294965760  ;;  %v4043_v1 = vmov 0.0   ;;  %vm4044_vm0 = vmmov 0   ;;  %v4045_v2 = vmov 0   ;;  %v4118_v3 = vld [vmem:[#allocation6 + $0x18] sm:$0xff] }
  0x20   :  { %3467 = vmatprep.subr.mxu0 %v4043_v1  ;;  %3475 = vmatprep.mubr.msk.f32.mxu0 %vm4044_vm0, %v4043_v1  ;;  %v4120_v4 = vld [vmem:[#allocation6 + $0x10] sm:$0xff]  ;;  %v63_v5 = vld [vmem:[%s4789_s0] sm:$0xff]  ;;  %vm186_vm1 = vcmask 261120   ;;  %v4160_v12 = vld [vmem:[%s4792_s3 + $0x18] sm:$0xff]  ;;  %vm864_vm2 = vcmask 7168   ;;  %s4046_s19 = smov [#allocation8]  }
  0x21   :  { %3915 = vset.pattern.permute.xlu0 %v4045_v2  ;;  %3478 = vmatprep.subr.mxu1 %v4043_v1  ;;  %v4128_v6 = vld [vmem:[#allocation6 + $0x8] sm:$0xff]  ;;  %v4136_v8 = vld [vmem:[#allocation6] sm:$0xff]  ;;  %v69_v11 = vld [vmem:[%s4789_s0 + $0x30] sm:$0xff]  ;;  %s3191_s20 = sshll.u32 %s4046_s19, 4  ;;  %s3192_s20 = int_to_ptr.vmem [resolvable:$true] %s3191_s20 }
  0x22   :  { %3486 = vmatprep.mubr.msk.f32.mxu1 %vm4044_vm0, %v4043_v1  ;;  %3916 = vset.pattern.permute.xlu1 %v4045_v2  ;;  %v64_v7 = vld [vmem:[%s4789_s0 + $0x8] sm:$0xff]  ;;  %v67_v10 = vld [vmem:[%s4789_s0 + $0x20] sm:$0xff]  ;;  %v4165_v13 = vld [vmem:[%s4792_s3 + $0x10] sm:$0xff]  ;;  %s4013_s21 = scalar_lea.vmem %s3192_s20, 384  ;;  %p4018_p11 = scmp.lt.s32.totalorder %s3192_s20, %s3192_s20 }
  0x23   :  { %3468 = vmatpush3.msra.mxu0 %v4118_v3  ;;  %3479 = vmatpush3.msra.mxu1 %v4118_v3  ;;  %v181_v9 = vld [vmem:[#allocation3] sm:$0xff]  ;;  %v4188_v16 = vld [vmem:[%s4791_s2] ss:$0 sm:$0xff]  ;;  %v4197_v24 = vld [vmem:[#allocation6 + $0x38] sm:$0xff]  ;;  %p4014_p10 = scmp.ne.s32.totalorder %s3192_s20, %s4013_s21  ;;  %p4019_p12 = scmp.lt.s32.totalorder %s4013_s21, %s4013_s21 }
  0x24   :  { %3469 = vmatprep.subr.mxu0 %v4043_v1  ;;  %73 = vperm.xlu0 %3915, %v63_v5   ;;  %v4172_v14 = vld [vmem:[%s4792_s3 + $0x8] sm:$0xff]  ;;  %v4179_v15 = vld [vmem:[%s4792_s3] sm:$0xff]  ;;  %v65_v30 = vld [vmem:[%s4789_s0 + $0x10] sm:$0xff] }
  0x25   :  { %3470 = vmatpush3.msra.mxu0 %v4120_v4  ;;  %3480 = vmatprep.subr.mxu1 %v4043_v1  ;;  %v4194_v19 = vld [vmem:[%s4794_s5] ss:$0 sm:$0xff]  ;;  %v4201_v26 = vld [vmem:[#allocation6 + $0x30] sm:$0xff]  ;;  %v4207_v27 = vld [vmem:[#allocation6 + $0x28] sm:$0xff]  ;;  %p4020_p13 = por %p4019_p12, %p4018_p11 }
  0x26   :  { %3471 = vmatprep.subr.mxu0 %v4043_v1  ;;  %3481 = vmatpush3.msra.mxu1 %v4120_v4  ;;  %v4213_v28 = vld [vmem:[#allocation6 + $0x20] sm:$0xff]  ;;  %v183_v29 = vld [vmem:[#allocation3 + $0x8] sm:$0xff]  ;;  %v4255_v42 = vld [vmem:[%s4794_s5 + $0x1] ss:$0 sm:$0xff] }
  0x27   :  { %3472 = vmatpush3.msra.mxu0 %v4128_v6  ;;  %3482 = vmatprep.subr.mxu1 %v4043_v1  ;;  %v66_v31 = vld [vmem:[%s4789_s0 + $0x18] sm:$0xff]  ;;  %v68_v32 = vld [vmem:[%s4789_s0 + $0x28] sm:$0xff]  ;;  %v4268_v49 = vld [vmem:[%s4792_s3 + $0x30] sm:$0xff]  ;;  %p4021_p0 = pnand %p4020_p13, %p4014_p10 }
  0x28   :  { %3473 = vmatprep.subr.mxu0 %v4043_v1  ;;  %78 = vperm.xlu0 %3915, %v64_v7   ;;  %v70_v33 = vld [vmem:[%s4789_s0 + $0x38] sm:$0xff]  ;;  %v4277_v50 = vld [vmem:[%s4792_s3 + $0x28] sm:$0xff]  ;;  %v4288_v51 = vld [vmem:[%s4792_s3 + $0x20] sm:$0xff] }
  0x29   :  { %3474 = vmatpush3.msra.mxu0 %v4136_v8  ;;  %3483 = vmatpush3.msra.mxu1 %v4128_v6  ;;  %v4261_v47 = vld [vmem:[%s4792_s3 + $0x38] sm:$0xff]  ;;  %v4303_v54 = vld [vmem:[#allocation6 + $0x50] sm:$0xff]  ;;  %v4310_v55 = vld [vmem:[#allocation6 + $0x48] sm:$0xff] }
  0x2a   :  { %3476 = vmatmul.mubr.msk.f32.vlgmr.msra.gmra.mxu0 %vm186_vm1, %v181_v9  ;;  %3489 = vmatprep.subr.mxu0 %v4043_v1  ;;  %v4298_v53 = vld [vmem:[#allocation6 + $0x58] sm:$0xff]  ;;  %v4316_v56 = vld [vmem:[#allocation6 + $0x40] sm:$0xff] }
  0x2b   :  { %3484 = vmatprep.subr.mxu1 %v4043_v1  ;;  %3497 = vmatprep.mubr.msk.f32.mxu0 %vm4044_vm0, %v4043_v1  ;;  %v185_v57 = vld [vmem:[#allocation3 + $0x10] sm:$0xff] }
  0x2c   :  { %93 = vperm.xlu0 %3915, %v67_v10   ;;  %3485 = vmatpush3.msra.mxu1 %v4136_v8 }
  0x2d   :  { %3500 = vmatprep.subr.mxu1 %v4043_v1  ;;  %3490 = vmatpush3.msra.mxu0 %v4160_v12 }
  0x2e   :  { %3491 = vmatprep.subr.mxu0 %v4043_v1  ;;  %83 = vperm.xlu1 %3916, %v65_v30   ;;  %v4387_v30 = vld [vmem:[%s4795_s6] ss:$0 sm:$0xff] }
  0x2f   :  { %3492 = vmatpush3.msra.mxu0 %v4165_v13 }
  0x30   :  { %103 = vperm.xlu0 %3915, %v69_v11   ;;  %3493 = vmatprep.subr.mxu0 %v4043_v1 }
  0x31   :  { %3494 = vmatpush3.msra.mxu0 %v4172_v14 }
  0x32   :  { %3495 = vmatprep.subr.mxu0 %v4043_v1  ;;  %88 = vperm.xlu1 %3916, %v66_v31  }
  0x33   :  { %3496 = vmatpush3.msra.mxu0 %v4179_v15 }
  0x34   :  { %3511 = vmatprep.subr.mxu0 %v4043_v1 }
  0x36   :  { %98 = vperm.xlu1 %3916, %v68_v32  }
  0x3a   :  { %108 = vperm.xlu1 %3916, %v70_v33  }
  0x9f   :  { %v74_v17 = vpop.permute.xlu0 %73 }
  0xa0   :  { %v117_v18 = vmul.f32 %v4188_v16, %v74_v17 }
  0xa2   :  { %v132_v20 = vadd.f32 %v4194_v19, %v117_v18  ;;  %v4347_v18 = vld [vmem:[%s4794_s5 + $0x2] ss:$0 sm:$0xff] }
  0xa3   :  { %v79_v34 = vpop.permute.xlu0 %78 }
  0xa4   :  { %v118_v35 = vmul.f32 %v4188_v16, %v79_v34 }
  0xa6   :  { %v133_v36 = vadd.f32 %v4194_v19, %v118_v35 }
  0xa7   :  { %v4412_v34 = vpop.permute.xlu0 %93 }
  0xa9   :  { %v84_v58 = vpop.permute.xlu1 %83 }
  0xaa   :  { %v119_v59 = vmul.f32 %v4188_v16, %v84_v58 }
  0xab   :  { %v4414_v35 = vpop.permute.xlu0 %103 }
  0xac   :  { %v134_v60 = vadd.f32 %v4194_v19, %v119_v59 }
  0xea   :  { %v256_v21 = vpop.f32.mrf.mxu0 }
  0xeb   :  { %v260_v22 = vadd.f32 %v256_v21, %v132_v20 }
  0xec   :  { %v3477_v23 = vpop.f32.mrf.mxu0 }
  0xed   :  { %3917 = vtanh.f32 %v260_v22 }
  0xfa   :  { %v3918_v25 = vpop.eup %3917 }
  0xfb   :  { %3487 = vmatmul.mubr.msk.f32.vlgmr.msra.gmra.mxu1 %vm186_vm1, %v3918_v25  ;;  %3498 = vmatmul.mubr.msk.f32.vlgmr.msra.gmra.mxu0 %vm186_vm1, %v3918_v25 }
  0xfc   :  { %3501 = vmatpush3.msra.mxu1 %v4197_v24  ;;  %3508 = vmatprep.mubr.msk.f32.mxu1 %vm4044_vm0, %v4043_v1 }
  0xfd   :  { %3502 = vmatprep.subr.mxu1 %v4043_v1  ;;  %3512 = vmatpush3.msra.mxu0 %v4118_v3 }
  0xfe   :  { %3503 = vmatpush3.msra.mxu1 %v4201_v26  ;;  %3513 = vmatprep.subr.mxu0 %v4043_v1 }
  0xff   :  { %3504 = vmatprep.subr.mxu1 %v4043_v1  ;;  %3514 = vmatpush3.msra.mxu0 %v4120_v4 }
 0x100   :  { %3505 = vmatpush3.msra.mxu1 %v4207_v27  ;;  %3515 = vmatprep.subr.mxu0 %v4043_v1 }
 0x101   :  { %3506 = vmatprep.subr.mxu1 %v4043_v1  ;;  %3516 = vmatpush3.msra.mxu0 %v4128_v6 }
 0x102   :  { %3507 = vmatpush3.msra.mxu1 %v4213_v28  ;;  %3517 = vmatprep.subr.mxu0 %v4043_v1 }
 0x103   :  { %3509 = vmatmul.mubr.msk.f32.vlgmr.msra.gmra.mxu1 %vm186_vm1, %v183_v29  ;;  %3522 = vmatprep.subr.mxu1 %v4043_v1 }
 0x104   :  { %3523 = vmatpush3.msra.mxu1 %v4160_v12  ;;  %3518 = vmatpush3.msra.mxu0 %v4136_v8 }
 0x105   :  { %3524 = vmatprep.subr.mxu1 %v4043_v1  ;;  %3519 = vmatprep.mubr.msk.f32.mxu0 %vm4044_vm0, %v4043_v1 }
 0x106   :  { %3525 = vmatpush3.msra.mxu1 %v4165_v13  ;;  %3530 = vmatprep.mubr.msk.f32.mxu1 %vm4044_vm0, %v4043_v1 }
 0x107   :  { %3526 = vmatprep.subr.mxu1 %v4043_v1  ;;  %3533 = vmatprep.subr.mxu0 %v4043_v1 }
 0x108   :  { %3527 = vmatpush3.msra.mxu1 %v4172_v14 }
 0x109   :  { %3528 = vmatprep.subr.mxu1 %v4043_v1 }
 0x10a   :  { %3529 = vmatpush3.msra.mxu1 %v4179_v15 }
 0x10b   :  { %3544 = vmatprep.subr.mxu1 %v4043_v1 }
 0x1bb   :  { %v331_v37 = vpop.f32.mrf.mxu1  ;;  %v403_v38 = vpop.f32.mrf.mxu0 }
 0x1bc   :  { %v335_v39 = vadd.f32 %v331_v37, %v133_v36  ;;  %v404_v43 = vadd.f32 %v4255_v42, %v403_v38  ;;  %v4416_v36 = vld [vmem:[#allocation2] ss:$0 sm:$0xff] }
 0x1bd   :  { %v3488_v40 = vpop.f32.mrf.mxu1  ;;  %v3499_v41 = vpop.f32.mrf.mxu0 }
 0x1be   :  { %3919 = vtanh.f32 %v335_v39  ;;  %v89_v39 = vpop.permute.xlu1 %88 }
 0x1bf   :  { %v120_v40 = vmul.f32 %v4188_v16, %v89_v39 }
 0x1c1   :  { %v135_v41 = vadd.f32 %v4194_v19, %v120_v40 }
 0x1c3   :  { %v476_v44 = vpop.f32.mrf.mxu1 }
 0x1c4   :  { %v480_v45 = vadd.f32 %v476_v44, %v404_v43 }
 0x1c5   :  { %v3510_v46 = vpop.f32.mrf.mxu1 }
 0x1c6   :  { %3921 = vtanh.f32 %v480_v45 }
 0x1cb   :  { %v3920_v48 = vpop.eup %3919 }
 0x1cc   :  { %3520 = vmatmul.mubr.msk.f32.vlgmr.msra.gmra.mxu0 %vm186_vm1, %v3920_v48  ;;  %3531 = vmatmul.mubr.msk.f32.vlgmr.msra.gmra.mxu1 %vm186_vm1, %v3920_v48 }
 0x1cd   :  { %3534 = vmatpush3.msra.mxu0 %v4197_v24  ;;  %3545 = vmatpush3.msra.mxu1 %v4261_v47 }
 0x1ce   :  { %3535 = vmatprep.subr.mxu0 %v4043_v1  ;;  %3546 = vmatprep.subr.mxu1 %v4043_v1 }
 0x1cf   :  { %3536 = vmatpush3.msra.mxu0 %v4201_v26  ;;  %3547 = vmatpush3.msra.mxu1 %v4268_v49 }
 0x1d0   :  { %3537 = vmatprep.subr.mxu0 %v4043_v1  ;;  %3548 = vmatprep.subr.mxu1 %v4043_v1 }
 0x1d1   :  { %3538 = vmatpush3.msra.mxu0 %v4207_v27  ;;  %3549 = vmatpush3.msra.mxu1 %v4277_v50 }
 0x1d2   :  { %3539 = vmatprep.subr.mxu0 %v4043_v1  ;;  %3550 = vmatprep.subr.mxu1 %v4043_v1 }
 0x1d3   :  { %v3922_v52 = vpop.eup %3921  ;;  %3540 = vmatpush3.msra.mxu0 %v4213_v28  ;;  %3541 = vmatprep.mubr.msk.f32.mxu0 %vm4044_vm0, %v4043_v1 }
 0x1d4   :  { %3551 = vmatpush3.msra.mxu1 %v4288_v51  ;;  %3552 = vmatprep.mubr.msk.f32.mxu1 %vm4044_vm0, %v4043_v1 }
 0x1d5   :  { %3542 = vmatmul.mubr.msk.f32.vlgmr.msra.gmra.mxu0 %vm186_vm1, %v3922_v52  ;;  %3553 = vmatmul.mubr.msk.f32.vlgmr.msra.gmra.mxu1 %vm186_vm1, %v3922_v52 }
 0x1d6   :  { %3555 = vmatprep.subr.mxu0 %v4043_v1  ;;  %3563 = vmatprep.mubr.msk.f32.mxu0 %vm4044_vm0, %v4043_v1 }
 0x1d7   :  { %3556 = vmatpush3.msra.mxu0 %v4298_v53  ;;  %3566 = vmatprep.subr.mxu1 %v4043_v1 }
 0x1d8   :  { %3557 = vmatprep.subr.mxu0 %v4043_v1  ;;  %3567 = vmatpush3.msra.mxu1 %v4118_v3 }
 0x1d9   :  { %3558 = vmatpush3.msra.mxu0 %v4303_v54  ;;  %3568 = vmatprep.subr.mxu1 %v4043_v1 }
 0x1da   :  { %3559 = vmatprep.subr.mxu0 %v4043_v1  ;;  %3569 = vmatpush3.msra.mxu1 %v4120_v4 }
 0x1db   :  { %3560 = vmatpush3.msra.mxu0 %v4310_v55  ;;  %3570 = vmatprep.subr.mxu1 %v4043_v1 }
 0x1dc   :  { %3561 = vmatprep.subr.mxu0 %v4043_v1  ;;  %3571 = vmatpush3.msra.mxu1 %v4128_v6 }
 0x1dd   :  { %3562 = vmatpush3.msra.mxu0 %v4316_v56  ;;  %3572 = vmatprep.subr.mxu1 %v4043_v1 }
 0x1de   :  { %3564 = vmatmul.mubr.msk.f32.vlgmr.msra.gmra.mxu0 %vm186_vm1, %v185_v57  ;;  %3577 = vmatprep.subr.mxu0 %v4043_v1 }
 0x1df   :  { %3578 = vmatpush3.msra.mxu0 %v4160_v12  ;;  %3573 = vmatpush3.msra.mxu1 %v4136_v8 }
 0x1e0   :  { %3579 = vmatprep.subr.mxu0 %v4043_v1  ;;  %3574 = vmatprep.mubr.msk.f32.mxu1 %vm4044_vm0, %v4043_v1 }
 0x1e1   :  { %3580 = vmatpush3.msra.mxu0 %v4165_v13  ;;  %3585 = vmatprep.mubr.msk.f32.mxu0 %vm4044_vm0, %v4043_v1 }
 0x1e2   :  { %3581 = vmatprep.subr.mxu0 %v4043_v1  ;;  %3588 = vmatprep.subr.mxu1 %v4043_v1 }
 0x1e3   :  { %3582 = vmatpush3.msra.mxu0 %v4172_v14 }
 0x1e4   :  { %3583 = vmatprep.subr.mxu0 %v4043_v1 }
 0x1e5   :  { %3584 = vmatpush3.msra.mxu0 %v4179_v15 }
 0x1e6   :  { %3599 = vmatprep.subr.mxu0 %v4043_v1 }
 0x28c   :  { %v551_v61 = vpop.f32.mrf.mxu0  ;;  %v623_v62 = vpop.f32.mrf.mxu1 }
 0x28d   :  { %v555_v63 = vadd.f32 %v551_v61, %v134_v60  ;;  %v624_v5 = vadd.f32 %v4255_v42, %v623_v62 }
 0x28e   :  { %v3521_v0 = vpop.f32.mrf.mxu0  ;;  %v3532_v2 = vpop.f32.mrf.mxu1 }
 0x28f   :  { %3923 = vtanh.f32 %v555_v63 }
 0x295   :  { %v696_v7 = vpop.f32.mrf.mxu0  ;;  %v768_v9 = vpop.f32.mrf.mxu1 }
 0x296   :  { %v700_v10 = vadd.f32 %v696_v7, %v624_v5  ;;  %v769_v21 = vadd.f32 %v4347_v18, %v768_v9 }
 0x297   :  { %v3543_v11 = vpop.f32.mrf.mxu0  ;;  %v3554_v17 = vpop.f32.mrf.mxu1 }
 0x298   :  { %3925 = vtanh.f32 %v700_v10  ;;  %v4484_v17 = vpop.permute.xlu1 %98 }
 0x29c   :  { %v3924_v20 = vpop.eup %3923 }
 0x29d   :  { %3575 = vmatmul.mubr.msk.f32.vlgmr.msra.gmra.mxu1 %vm186_vm1, %v3924_v20  ;;  %3586 = vmatmul.mubr.msk.f32.vlgmr.msra.gmra.mxu0 %vm186_vm1, %v3924_v20  ;;  %v4486_v20 = vpop.permute.xlu1 %108 }
 0x29e   :  { %v841_v22 = vpop.f32.mrf.mxu0  ;;  %3589 = vmatpush3.msra.mxu1 %v4197_v24  ;;  %3600 = vmatpush3.msra.mxu0 %v4261_v47 }
 0x29f   :  { %v845_v23 = vadd.f32 %v841_v22, %v769_v21  ;;  %3590 = vmatprep.subr.mxu1 %v4043_v1  ;;  %3601 = vmatprep.subr.mxu0 %v4043_v1 }
 0x2a0   :  { %v3565_v25 = vpop.f32.mrf.mxu0  ;;  %3591 = vmatpush3.msra.mxu1 %v4201_v26  ;;  %3602 = vmatpush3.msra.mxu0 %v4268_v49 }
 0x2a1   :  { %3927 = vtanh.f32 %v845_v23  ;;  %3592 = vmatprep.subr.mxu1 %v4043_v1  ;;  %3603 = vmatprep.subr.mxu0 %v4043_v1  ;;  %v121_v23 = vmul.f32 %v4188_v16, %v4412_v34 }
 0x2a2   :  { %3593 = vmatpush3.msra.mxu1 %v4207_v27  ;;  %3604 = vmatpush3.msra.mxu0 %v4277_v50 }
 0x2a3   :  { %3594 = vmatprep.subr.mxu1 %v4043_v1  ;;  %3605 = vmatprep.subr.mxu0 %v4043_v1  ;;  %v136_v25 = vadd.f32 %v4194_v19, %v121_v23 }
 0x2a4   :  { %3595 = vmatpush3.msra.mxu1 %v4213_v28  ;;  %3596 = vmatprep.mubr.msk.f32.mxu1 %vm4044_vm0, %v4043_v1 }
 0x2a5   :  { %v3926_v29 = vpop.eup %3925  ;;  %3606 = vmatpush3.msra.mxu0 %v4288_v51  ;;  %3607 = vmatprep.mubr.msk.f32.mxu0 %vm4044_vm0, %v4043_v1 }
 0x2a6   :  { %3597 = vmatmul.mubr.msk.f32.vlgmr.msra.gmra.mxu1 %vm186_vm1, %v3926_v29  ;;  %3608 = vmatmul.mubr.msk.f32.vlgmr.msra.gmra.mxu0 %vm186_vm1, %v3926_v29 }
 0x2a7   :  { %3610 = vmatprep.subr.mxu1 %v4043_v1  ;;  %3618 = vmatprep.mubr.msk.f32.mxu1 %vm4044_vm0, %v4043_v1 }
 0x2a8   :  { %3611 = vmatpush3.msra.mxu1 %v4298_v53  ;;  %3621 = vmatprep.subr.mxu0 %v4043_v1 }
 0x2a9   :  { %3612 = vmatprep.subr.mxu1 %v4043_v1  ;;  %3622 = vmatpush3.msra.mxu0 %v4118_v3 }
 0x2aa   :  { %3613 = vmatpush3.msra.mxu1 %v4303_v54  ;;  %3623 = vmatprep.subr.mxu0 %v4043_v1 }
 0x2ab   :  { %3614 = vmatprep.subr.mxu1 %v4043_v1  ;;  %3624 = vmatpush3.msra.mxu0 %v4120_v4 }
 0x2ac   :  { %3615 = vmatpush3.msra.mxu1 %v4310_v55  ;;  %3625 = vmatprep.subr.mxu0 %v4043_v1 }
 0x2ad   :  { %3616 = vmatprep.subr.mxu1 %v4043_v1  ;;  %3626 = vmatpush3.msra.mxu0 %v4128_v6 }
 0x2ae   :  { %v3928_v31 = vpop.eup %3927  ;;  %3617 = vmatpush3.msra.mxu1 %v4316_v56  ;;  %3627 = vmatprep.subr.mxu0 %v4043_v1 }
 0x2af   :  { %3619 = vmatmul.mubr.msk.f32.vlgmr.msra.gmra.mxu1 %vm186_vm1, %v3928_v31  ;;  %v853_v32 = vmul.f32 %v3928_v31, %v4387_v30  ;;  %3632 = vmatprep.subr.mxu1 %v4043_v1 }
 0x2b0   :  { %3633 = vmatpush3.msra.mxu1 %v4160_v12  ;;  %3628 = vmatpush3.msra.mxu0 %v4136_v8 }
 0x2b1   :  { %v854_v33 = vsel %vm186_vm1, %v853_v32, 0.0  ;;  %3634 = vmatprep.subr.mxu1 %v4043_v1  ;;  %3629 = vmatprep.mubr.msk.f32.mxu0 %vm4044_vm0, %v4043_v1 }
 0x2b2   :  { %855 = vadd.xlane.f32.xlu0 %v854_v33  ;;  %3635 = vmatpush3.msra.mxu1 %v4165_v13 }
 0x2b3   :  { %3636 = vmatprep.subr.mxu1 %v4043_v1  ;;  %3640 = vmatprep.mubr.msk.f32.mxu1 %vm4044_vm0, %v4043_v1 }
 0x2b4   :  { %3637 = vmatpush3.msra.mxu1 %v4172_v14  ;;  %3643 = vmatprep.subr.mxu0 %v4043_v1 }
 0x2b5   :  { %3638 = vmatprep.subr.mxu1 %v4043_v1 }
 0x2b6   :  { %3639 = vmatpush3.msra.mxu1 %v4179_v15 }
 0x2b7   :  { %3654 = vmatprep.subr.mxu1 %v4043_v1 }
 0x33b   :  { %v856_v37 = vpop.xlane.xlu0 %855 }
 0x33c   :  { %v863_v38 = vadd.f32 %v4416_v36, %v856_v37 }
 0x33e   :  { %865 = vst.msk [vmem:[%s4798_s9] sm:$0xff] %vm864_vm2, %v863_v38 }
 0x35d   :  { %v935_v43 = vpop.f32.mrf.mxu1  ;;  %v1007_v44 = vpop.f32.mrf.mxu0 }
 0x35e   :  { %v939_v45 = vadd.f32 %v935_v43, %v135_v41  ;;  %v1008_v52 = vadd.f32 %v4255_v42, %v1007_v44 }
 0x35f   :  { %v3576_v46 = vpop.f32.mrf.mxu1  ;;  %v3587_v48 = vpop.f32.mrf.mxu0 }
 0x360   :  { %3929 = vtanh.f32 %v939_v45 }
 0x366   :  { %v1080_v57 = vpop.f32.mrf.mxu1  ;;  %v1152_v58 = vpop.f32.mrf.mxu0 }
 0x367   :  { %v1084_v59 = vadd.f32 %v1080_v57, %v1008_v52  ;;  %v1153_v63 = vadd.f32 %v4347_v18, %v1152_v58 }
 0x368   :  { %v3598_v60 = vpop.f32.mrf.mxu1  ;;  %v3609_v61 = vpop.f32.mrf.mxu0 }
 0x369   :  { %3931 = vtanh.f32 %v1084_v59 }
 0x36d   :  { %v3930_v62 = vpop.eup %3929 }
 0x36e   :  { %3630 = vmatmul.mubr.msk.f32.vlgmr.msra.gmra.mxu0 %vm186_vm1, %v3930_v62  ;;  %3641 = vmatmul.mubr.msk.f32.vlgmr.msra.gmra.mxu1 %vm186_vm1, %v3930_v62 }
 0x36f   :  { %v1225_v0 = vpop.f32.mrf.mxu1  ;;  %3644 = vmatpush3.msra.mxu0 %v4197_v24  ;;  %3655 = vmatpush3.msra.mxu1 %v4261_v47 }
 0x370   :  { %v1229_v2 = vadd.f32 %v1225_v0, %v1153_v63  ;;  %3645 = vmatprep.subr.mxu0 %v4043_v1  ;;  %3656 = vmatprep.subr.mxu1 %v4043_v1  ;;  %v122_v63 = vmul.f32 %v4188_v16, %v4484_v17 }
 0x371   :  { %v3620_v5 = vpop.f32.mrf.mxu1  ;;  %3646 = vmatpush3.msra.mxu0 %v4201_v26  ;;  %3657 = vmatpush3.msra.mxu1 %v4268_v49 }
 0x372   :  { %3933 = vtanh.f32 %v1229_v2  ;;  %3647 = vmatprep.subr.mxu0 %v4043_v1  ;;  %3658 = vmatprep.subr.mxu1 %v4043_v1  ;;  %v137_v0 = vadd.f32 %v4194_v19, %v122_v63 }
 0x373   :  { %3648 = vmatpush3.msra.mxu0 %v4207_v27  ;;  %3659 = vmatpush3.msra.mxu1 %v4277_v50 }
 0x374   :  { %3649 = vmatprep.subr.mxu0 %v4043_v1  ;;  %3660 = vmatprep.subr.mxu1 %v4043_v1 }
 0x375   :  { %3650 = vmatpush3.msra.mxu0 %v4213_v28  ;;  %3651 = vmatprep.mubr.msk.f32.mxu0 %vm4044_vm0, %v4043_v1 }
 0x376   :  { %v3932_v7 = vpop.eup %3931  ;;  %3661 = vmatpush3.msra.mxu1 %v4288_v51  ;;  %3662 = vmatprep.mubr.msk.f32.mxu1 %vm4044_vm0, %v4043_v1 }
 0x377   :  { %3652 = vmatmul.mubr.msk.f32.vlgmr.msra.gmra.mxu0 %vm186_vm1, %v3932_v7  ;;  %3663 = vmatmul.mubr.msk.f32.vlgmr.msra.gmra.mxu1 %vm186_vm1, %v3932_v7 }
 0x378   :  { %3665 = vmatprep.subr.mxu0 %v4043_v1  ;;  %3673 = vmatprep.mubr.msk.f32.mxu0 %vm4044_vm0, %v4043_v1 }
 0x379   :  { %3666 = vmatpush3.msra.mxu0 %v4298_v53  ;;  %3676 = vmatprep.subr.mxu1 %v4043_v1 }
 0x37a   :  { %3667 = vmatprep.subr.mxu0 %v4043_v1  ;;  %3677 = vmatpush3.msra.mxu1 %v4118_v3 }
 0x37b   :  { %3668 = vmatpush3.msra.mxu0 %v4303_v54  ;;  %3678 = vmatprep.subr.mxu1 %v4043_v1 }
 0x37c   :  { %3669 = vmatprep.subr.mxu0 %v4043_v1  ;;  %3679 = vmatpush3.msra.mxu1 %v4120_v4 }
 0x37d   :  { %3670 = vmatpush3.msra.mxu0 %v4310_v55  ;;  %3680 = vmatprep.subr.mxu1 %v4043_v1 }
 0x37e   :  { %3671 = vmatprep.subr.mxu0 %v4043_v1  ;;  %3681 = vmatpush3.msra.mxu1 %v4128_v6 }
 0x37f   :  { %v3934_v9 = vpop.eup %3933  ;;  %3672 = vmatpush3.msra.mxu0 %v4316_v56  ;;  %3682 = vmatprep.subr.mxu1 %v4043_v1 }
 0x380   :  { %3674 = vmatmul.mubr.msk.f32.vlgmr.msra.gmra.mxu0 %vm186_vm1, %v3934_v9  ;;  %v1231_v10 = vmul.f32 %v3934_v9, %v4387_v30  ;;  %3687 = vmatprep.subr.mxu0 %v4043_v1 }
 0x381   :  { %3688 = vmatpush3.msra.mxu0 %v4160_v12  ;;  %3683 = vmatpush3.msra.mxu1 %v4136_v8 }
 0x382   :  { %v1232_v11 = vsel %vm186_vm1, %v1231_v10, 0.0  ;;  %3689 = vmatprep.subr.mxu0 %v4043_v1  ;;  %3684 = vmatprep.mubr.msk.f32.mxu1 %vm4044_vm0, %v4043_v1 }
 0x383   :  { %1233 = vadd.xlane.f32.xlu1 %v1232_v11  ;;  %3690 = vmatpush3.msra.mxu0 %v4165_v13 }
 0x384   :  { %3691 = vmatprep.subr.mxu0 %v4043_v1  ;;  %3695 = vmatprep.mubr.msk.f32.mxu0 %vm4044_vm0, %v4043_v1 }
 0x385   :  { %3692 = vmatpush3.msra.mxu0 %v4172_v14  ;;  %3698 = vmatprep.subr.mxu1 %v4043_v1 }
 0x386   :  { %3693 = vmatprep.subr.mxu0 %v4043_v1 }
 0x387   :  { %3694 = vmatpush3.msra.mxu0 %v4179_v15 }
 0x388   :  { %3709 = vmatprep.subr.mxu0 %v4043_v1 }
 0x40c   :  { %v1234_v21 = vpop.xlane.xlu1 %1233 }
 0x40d   :  { %v1235_v22 = vadd.f32 %v4416_v36, %v1234_v21 }
 0x40f   :  { %3234 = vst.msk [vmem:[%s4798_s9 + $0x8] sm:$0xff] %vm864_vm2, %v1235_v22 }
 0x42e   :  { %v1307_v29 = vpop.f32.mrf.mxu0  ;;  %v1379_v31 = vpop.f32.mrf.mxu1 }
 0x42f   :  { %v1311_v32 = vadd.f32 %v1307_v29, %v136_v25  ;;  %v1380_v38 = vadd.f32 %v4255_v42, %v1379_v31 }
 0x430   :  { %v3631_v33 = vpop.f32.mrf.mxu0  ;;  %v3642_v37 = vpop.f32.mrf.mxu1 }
 0x431   :  { %3935 = vtanh.f32 %v1311_v32 }
 0x437   :  { %v1452_v39 = vpop.f32.mrf.mxu0  ;;  %v1524_v40 = vpop.f32.mrf.mxu1 }
 0x438   :  { %v1456_v41 = vadd.f32 %v1452_v39, %v1380_v38  ;;  %v1525_v46 = vadd.f32 %v4347_v18, %v1524_v40 }
 0x439   :  { %v3653_v43 = vpop.f32.mrf.mxu0  ;;  %v3664_v44 = vpop.f32.mrf.mxu1 }
 0x43a   :  { %3937 = vtanh.f32 %v1456_v41 }
 0x43e   :  { %v3936_v45 = vpop.eup %3935 }
 0x43f   :  { %3685 = vmatmul.mubr.msk.f32.vlgmr.msra.gmra.mxu1 %vm186_vm1, %v3936_v45  ;;  %3696 = vmatmul.mubr.msk.f32.vlgmr.msra.gmra.mxu0 %vm186_vm1, %v3936_v45 }
 0x440   :  { %v1597_v34 = vpop.f32.mrf.mxu0  ;;  %3699 = vmatpush3.msra.mxu1 %v4197_v24  ;;  %3710 = vmatpush3.msra.mxu0 %v4261_v47 }
 0x441   :  { %v1601_v48 = vadd.f32 %v1597_v34, %v1525_v46  ;;  %3700 = vmatprep.subr.mxu1 %v4043_v1  ;;  %3711 = vmatprep.subr.mxu0 %v4043_v1 }
 0x442   :  { %v3675_v52 = vpop.f32.mrf.mxu0  ;;  %3701 = vmatpush3.msra.mxu1 %v4201_v26  ;;  %3712 = vmatpush3.msra.mxu0 %v4268_v49 }
 0x443   :  { %3939 = vtanh.f32 %v1601_v48  ;;  %3702 = vmatprep.subr.mxu1 %v4043_v1  ;;  %3713 = vmatprep.subr.mxu0 %v4043_v1 }
 0x444   :  { %3703 = vmatpush3.msra.mxu1 %v4207_v27  ;;  %3714 = vmatpush3.msra.mxu0 %v4277_v50 }
 0x445   :  { %3704 = vmatprep.subr.mxu1 %v4043_v1  ;;  %3715 = vmatprep.subr.mxu0 %v4043_v1 }
 0x446   :  { %3705 = vmatpush3.msra.mxu1 %v4213_v28  ;;  %3706 = vmatprep.mubr.msk.f32.mxu1 %vm4044_vm0, %v4043_v1 }
 0x447   :  { %v3938_v57 = vpop.eup %3937  ;;  %3716 = vmatpush3.msra.mxu0 %v4288_v51  ;;  %3717 = vmatprep.mubr.msk.f32.mxu0 %vm4044_vm0, %v4043_v1 }
 0x448   :  { %3707 = vmatmul.mubr.msk.f32.vlgmr.msra.gmra.mxu1 %vm186_vm1, %v3938_v57  ;;  %3718 = vmatmul.mubr.msk.f32.vlgmr.msra.gmra.mxu0 %vm186_vm1, %v3938_v57 }
 0x449   :  { %3720 = vmatprep.subr.mxu1 %v4043_v1  ;;  %3728 = vmatprep.mubr.msk.f32.mxu1 %vm4044_vm0, %v4043_v1 }
 0x44a   :  { %3721 = vmatpush3.msra.mxu1 %v4298_v53  ;;  %3731 = vmatprep.subr.mxu0 %v4043_v1 }
 0x44b   :  { %3722 = vmatprep.subr.mxu1 %v4043_v1  ;;  %3732 = vmatpush3.msra.mxu0 %v4118_v3 }
 0x44c   :  { %3723 = vmatpush3.msra.mxu1 %v4303_v54  ;;  %3733 = vmatprep.subr.mxu0 %v4043_v1 }
 0x44d   :  { %3724 = vmatprep.subr.mxu1 %v4043_v1  ;;  %3734 = vmatpush3.msra.mxu0 %v4120_v4 }
 0x44e   :  { %3725 = vmatpush3.msra.mxu1 %v4310_v55  ;;  %3735 = vmatprep.subr.mxu0 %v4043_v1 }
 0x44f   :  { %3726 = vmatprep.subr.mxu1 %v4043_v1  ;;  %3736 = vmatpush3.msra.mxu0 %v4128_v6 }
 0x450   :  { %v3940_v58 = vpop.eup %3939  ;;  %3727 = vmatpush3.msra.mxu1 %v4316_v56  ;;  %3737 = vmatprep.subr.mxu0 %v4043_v1 }
 0x451   :  { %3729 = vmatmul.mubr.msk.f32.vlgmr.msra.gmra.mxu1 %vm186_vm1, %v3940_v58  ;;  %v1603_v59 = vmul.f32 %v3940_v58, %v4387_v30  ;;  %3742 = vmatprep.subr.mxu1 %v4043_v1 }
 0x452   :  { %3743 = vmatpush3.msra.mxu1 %v4160_v12  ;;  %3738 = vmatpush3.msra.mxu0 %v4136_v8 }
 0x453   :  { %v1604_v60 = vsel %vm186_vm1, %v1603_v59, 0.0  ;;  %3744 = vmatprep.subr.mxu1 %v4043_v1  ;;  %3739 = vmatprep.mubr.msk.f32.mxu0 %vm4044_vm0, %v4043_v1  ;;  %v3965_v59 = vld [vmem:[%s4792_s3 + $0x18] sm:$0xff] }
 0x454   :  { %1605 = vadd.xlane.f32.xlu0 %v1604_v60  ;;  %3745 = vmatpush3.msra.mxu1 %v4165_v13  ;;  %v3966_v60 = vld [vmem:[%s4792_s3 + $0x10] sm:$0xff] }
 0x455   :  { %3746 = vmatprep.subr.mxu1 %v4043_v1  ;;  %3750 = vmatprep.mubr.msk.f32.mxu1 %vm4044_vm0, %v4043_v1 }
 0x456   :  { %3747 = vmatpush3.msra.mxu1 %v4172_v14  ;;  %3753 = vmatprep.subr.mxu0 %v4043_v1 }
 0x457   :  { %3748 = vmatprep.subr.mxu1 %v4043_v1 }
 0x458   :  { %3749 = vmatpush3.msra.mxu1 %v4179_v15 }
 0x459   :  { %3764 = vmatprep.subr.mxu1 %v4043_v1 }
 0x4dd   :  { %v1606_v61 = vpop.xlane.xlu0 %1605 }
 0x4de   :  { %v1607_v62 = vadd.f32 %v4416_v36, %v1606_v61  ;;  %v3967_v61 = vld [vmem:[%s4792_s3 + $0x8] sm:$0xff] }
 0x4e0   :  { %3240 = vst.msk [vmem:[%s4798_s9 + $0x10] sm:$0xff] %vm864_vm2, %v1607_v62 }
 0x4ff   :  { %v1679_v2 = vpop.f32.mrf.mxu1  ;;  %v1751_v5 = vpop.f32.mrf.mxu0 }
 0x500   :  { %v1683_v7 = vadd.f32 %v1679_v2, %v137_v0  ;;  %v1752_v11 = vadd.f32 %v4255_v42, %v1751_v5  ;;  %v3968_v0 = vld [vmem:[%s4792_s3] sm:$0xff]  ;;  %v3969_v5 = vld [vmem:[#allocation6 + $0x38] sm:$0xff] }
 0x501   :  { %v3686_v9 = vpop.f32.mrf.mxu1  ;;  %v3697_v10 = vpop.f32.mrf.mxu0 }
 0x502   :  { %3941 = vtanh.f32 %v1683_v7 }
 0x508   :  { %v1824_v21 = vpop.f32.mrf.mxu1  ;;  %v1896_v22 = vpop.f32.mrf.mxu0 }
 0x509   :  { %v1828_v23 = vadd.f32 %v1824_v21, %v1752_v11  ;;  %v1897_v32 = vadd.f32 %v4347_v18, %v1896_v22 }
 0x50a   :  { %v3708_v25 = vpop.f32.mrf.mxu1  ;;  %v3719_v29 = vpop.f32.mrf.mxu0 }
 0x50b   :  { %3943 = vtanh.f32 %v1828_v23 }
 0x50f   :  { %v3942_v31 = vpop.eup %3941 }
 0x510   :  { %3740 = vmatmul.mubr.msk.f32.vlgmr.msra.gmra.mxu0 %vm186_vm1, %v3942_v31  ;;  %3751 = vmatmul.mubr.msk.f32.vlgmr.msra.gmra.mxu1 %vm186_vm1, %v3942_v31 }
 0x511   :  { %v1969_v17 = vpop.f32.mrf.mxu1  ;;  %3754 = vmatpush3.msra.mxu0 %v4197_v24  ;;  %3765 = vmatpush3.msra.mxu1 %v4261_v47 }
 0x512   :  { %v1973_v33 = vadd.f32 %v1969_v17, %v1897_v32  ;;  %3755 = vmatprep.subr.mxu0 %v4043_v1  ;;  %3766 = vmatprep.subr.mxu1 %v4043_v1 }
 0x513   :  { %v3730_v37 = vpop.f32.mrf.mxu1  ;;  %3756 = vmatpush3.msra.mxu0 %v4201_v26  ;;  %3767 = vmatpush3.msra.mxu1 %v4268_v49 }
 0x514   :  { %3945 = vtanh.f32 %v1973_v33  ;;  %3757 = vmatprep.subr.mxu0 %v4043_v1  ;;  %3768 = vmatprep.subr.mxu1 %v4043_v1 }
 0x515   :  { %3758 = vmatpush3.msra.mxu0 %v4207_v27  ;;  %3769 = vmatpush3.msra.mxu1 %v4277_v50 }
 0x516   :  { %3759 = vmatprep.subr.mxu0 %v4043_v1  ;;  %3770 = vmatprep.subr.mxu1 %v4043_v1 }
 0x517   :  { %3760 = vmatpush3.msra.mxu0 %v4213_v28  ;;  %3761 = vmatprep.mubr.msk.f32.mxu0 %vm4044_vm0, %v4043_v1 }
 0x518   :  { %v3944_v38 = vpop.eup %3943  ;;  %3771 = vmatpush3.msra.mxu1 %v4288_v51  ;;  %3772 = vmatprep.mubr.msk.f32.mxu1 %vm4044_vm0, %v4043_v1 }
 0x519   :  { %3762 = vmatmul.mubr.msk.f32.vlgmr.msra.gmra.mxu0 %vm186_vm1, %v3944_v38  ;;  %3773 = vmatmul.mubr.msk.f32.vlgmr.msra.gmra.mxu1 %vm186_vm1, %v3944_v38 }
 0x51a   :  { %3775 = vmatprep.subr.mxu0 %v4043_v1  ;;  %3783 = vmatprep.mubr.msk.f32.mxu0 %vm4044_vm0, %v4043_v1 }
 0x51b   :  { %3776 = vmatpush3.msra.mxu0 %v4298_v53  ;;  %3786 = vmatprep.subr.mxu1 %v4043_v1 }
 0x51c   :  { %3777 = vmatprep.subr.mxu0 %v4043_v1  ;;  %3787 = vmatpush3.msra.mxu1 %v4118_v3 }
 0x51d   :  { %3778 = vmatpush3.msra.mxu0 %v4303_v54  ;;  %3788 = vmatprep.subr.mxu1 %v4043_v1 }
 0x51e   :  { %3779 = vmatprep.subr.mxu0 %v4043_v1  ;;  %3789 = vmatpush3.msra.mxu1 %v4120_v4 }
 0x51f   :  { %3780 = vmatpush3.msra.mxu0 %v4310_v55  ;;  %3790 = vmatprep.subr.mxu1 %v4043_v1 }
 0x520   :  { %3781 = vmatprep.subr.mxu0 %v4043_v1  ;;  %3791 = vmatpush3.msra.mxu1 %v4128_v6 }
 0x521   :  { %v3946_v39 = vpop.eup %3945  ;;  %3782 = vmatpush3.msra.mxu0 %v4316_v56  ;;  %3792 = vmatprep.subr.mxu1 %v4043_v1 }
 0x522   :  { %3784 = vmatmul.mubr.msk.f32.vlgmr.msra.gmra.mxu0 %vm186_vm1, %v3946_v39  ;;  %v1975_v3 = vmul.f32 %v3946_v39, %v4387_v30  ;;  %3797 = vmatprep.subr.mxu0 %v4043_v1 }
 0x523   :  { %3798 = vmatpush3.msra.mxu0 %v4160_v12  ;;  %3793 = vmatpush3.msra.mxu1 %v4136_v8  ;;  %v123_v12 = vmul.f32 %v4188_v16, %v4414_v35 }
 0x524   :  { %v1976_v4 = vsel %vm186_vm1, %v1975_v3, 0.0  ;;  %3799 = vmatprep.subr.mxu0 %v4043_v1  ;;  %3794 = vmatprep.mubr.msk.f32.mxu1 %vm4044_vm0, %v4043_v1 }
 0x525   :  { %1977 = vadd.xlane.f32.xlu0 %v1976_v4  ;;  %3800 = vmatpush3.msra.mxu0 %v4165_v13  ;;  %v138_v13 = vadd.f32 %v4194_v19, %v123_v12 }
 0x526   :  { %3801 = vmatprep.subr.mxu0 %v4043_v1  ;;  %3805 = vmatprep.mubr.msk.f32.mxu0 %vm4044_vm0, %v4043_v1 }
 0x527   :  { %3802 = vmatpush3.msra.mxu0 %v4172_v14  ;;  %3808 = vmatprep.subr.mxu1 %v4043_v1 }
 0x528   :  { %3803 = vmatprep.subr.mxu0 %v4043_v1 }
 0x529   :  { %3804 = vmatpush3.msra.mxu0 %v4179_v15 }
 0x52a   :  { %3819 = vmatprep.subr.mxu0 %v4043_v1 }
 0x5ae   :  { %v1978_v6 = vpop.xlane.xlu0 %1977 }
 0x5af   :  { %v1979_v8 = vadd.f32 %v4416_v36, %v1978_v6 }
 0x5b1   :  { %3246 = vst.msk [vmem:[%s4798_s9 + $0x18] sm:$0xff] %vm864_vm2, %v1979_v8 }
 0x5d0   :  { %v2051_v14 = vpop.f32.mrf.mxu0  ;;  %v2123_v40 = vpop.f32.mrf.mxu1 }
 0x5d1   :  { %v2055_v41 = vadd.f32 %v2051_v14, %v138_v13  ;;  %v2124_v44 = vadd.f32 %v4255_v42, %v2123_v40 }
 0x5d2   :  { %v3741_v43 = vpop.f32.mrf.mxu0  ;;  %v3752_v15 = vpop.f32.mrf.mxu1 }
 0x5d3   :  { %3947 = vtanh.f32 %v2055_v41 }
 0x5d9   :  { %v2196_v45 = vpop.f32.mrf.mxu0  ;;  %v2268_v46 = vpop.f32.mrf.mxu1 }
 0x5da   :  { %v2200_v34 = vadd.f32 %v2196_v45, %v2124_v44  ;;  %v2269_v58 = vadd.f32 %v4347_v18, %v2268_v46 }
 0x5db   :  { %v3763_v48 = vpop.f32.mrf.mxu0  ;;  %v3774_v52 = vpop.f32.mrf.mxu1 }
 0x5dc   :  { %3949 = vtanh.f32 %v2200_v34 }
 0x5e0   :  { %v3948_v57 = vpop.eup %3947 }
 0x5e1   :  { %3795 = vmatmul.mubr.msk.f32.vlgmr.msra.gmra.mxu1 %vm186_vm1, %v3948_v57  ;;  %3806 = vmatmul.mubr.msk.f32.vlgmr.msra.gmra.mxu0 %vm186_vm1, %v3948_v57 }
 0x5e2   :  { %v2341_v16 = vpop.f32.mrf.mxu0  ;;  %3809 = vmatpush3.msra.mxu1 %v4197_v24  ;;  %3820 = vmatpush3.msra.mxu0 %v4261_v47 }
 0x5e3   :  { %v2345_v19 = vadd.f32 %v2341_v16, %v2269_v58  ;;  %3810 = vmatprep.subr.mxu1 %v4043_v1  ;;  %3821 = vmatprep.subr.mxu0 %v4043_v1 }
 0x5e4   :  { %v3785_v35 = vpop.f32.mrf.mxu0  ;;  %3811 = vmatpush3.msra.mxu1 %v4201_v26  ;;  %3822 = vmatpush3.msra.mxu0 %v4268_v49 }
 0x5e5   :  { %3951 = vtanh.f32 %v2345_v19  ;;  %3812 = vmatprep.subr.mxu1 %v4043_v1  ;;  %3823 = vmatprep.subr.mxu0 %v4043_v1 }
 0x5e6   :  { %3813 = vmatpush3.msra.mxu1 %v4207_v27  ;;  %3824 = vmatpush3.msra.mxu0 %v4277_v50 }
 0x5e7   :  { %3814 = vmatprep.subr.mxu1 %v4043_v1  ;;  %3825 = vmatprep.subr.mxu0 %v4043_v1 }
 0x5e8   :  { %3815 = vmatpush3.msra.mxu1 %v4213_v28  ;;  %3816 = vmatprep.mubr.msk.f32.mxu1 %vm4044_vm0, %v4043_v1 }
 0x5e9   :  { %v3950_v24 = vpop.eup %3949  ;;  %3826 = vmatpush3.msra.mxu0 %v4288_v51  ;;  %3827 = vmatprep.mubr.msk.f32.mxu0 %vm4044_vm0, %v4043_v1 }
 0x5ea   :  { %3817 = vmatmul.mubr.msk.f32.vlgmr.msra.gmra.mxu1 %vm186_vm1, %v3950_v24  ;;  %3828 = vmatmul.mubr.msk.f32.vlgmr.msra.gmra.mxu0 %vm186_vm1, %v3950_v24 }
 0x5eb   :  { %3830 = vmatprep.subr.mxu1 %v4043_v1  ;;  %3838 = vmatprep.mubr.msk.f32.mxu1 %vm4044_vm0, %v4043_v1 }
 0x5ec   :  { %3831 = vmatpush3.msra.mxu1 %v4298_v53  ;;  %3841 = vmatprep.subr.mxu0 %v4043_v1 }
 0x5ed   :  { %3832 = vmatprep.subr.mxu1 %v4043_v1  ;;  %3842 = vmatpush3.msra.mxu0 %v3965_v59 }
 0x5ee   :  { %3833 = vmatpush3.msra.mxu1 %v4303_v54  ;;  %3843 = vmatprep.subr.mxu0 %v4043_v1 }
 0x5ef   :  { %3834 = vmatprep.subr.mxu1 %v4043_v1  ;;  %3844 = vmatpush3.msra.mxu0 %v3966_v60 }
 0x5f0   :  { %3835 = vmatpush3.msra.mxu1 %v4310_v55  ;;  %3845 = vmatprep.subr.mxu0 %v4043_v1 }
 0x5f1   :  { %3836 = vmatprep.subr.mxu1 %v4043_v1  ;;  %3846 = vmatpush3.msra.mxu0 %v3967_v61 }
 0x5f2   :  { %v3952_v62 = vpop.eup %3951  ;;  %3837 = vmatpush3.msra.mxu1 %v4316_v56  ;;  %3847 = vmatprep.subr.mxu0 %v4043_v1 }
 0x5f3   :  { %3839 = vmatmul.mubr.msk.f32.vlgmr.msra.gmra.mxu1 %vm186_vm1, %v3952_v62  ;;  %v2347_v63 = vmul.f32 %v3952_v62, %v4387_v30  ;;  %3848 = vmatpush3.msra.mxu0 %v3968_v0 }
 0x5f4   :  { %3849 = vmatprep.mubr.msk.f32.mxu0 %vm4044_vm0, %v4043_v1  ;;  %3852 = vmatprep.subr.mxu1 %v4043_v1 }
 0x5f5   :  { %v2348_v2 = vsel %vm186_vm1, %v2347_v63, 0.0  ;;  %3863 = vmatprep.subr.mxu0 %v4043_v1  ;;  %3853 = vmatpush3.msra.mxu1 %v3969_v5 }
 0x5f6   :  { %2349 = vadd.xlane.f32.xlu1 %v2348_v2  ;;  %3854 = vmatprep.subr.mxu1 %v4043_v1 }
 0x5f7   :  { %3855 = vmatpush3.msra.mxu1 %v4201_v26  ;;  %3860 = vmatprep.mubr.msk.f32.mxu1 %vm4044_vm0, %v4043_v1  ;;  %v3970_v26 = vld [vmem:[%s4791_s2] ss:$0 sm:$0xff] }
 0x5f8   :  { %3856 = vmatprep.subr.mxu1 %v4043_v1 }
 0x5f9   :  { %3857 = vmatpush3.msra.mxu1 %v4207_v27  ;;  %v124_v27 = vmul.f32 %v3970_v26, %v4486_v20 }
 0x5fa   :  { %3858 = vmatprep.subr.mxu1 %v4043_v1 }
 0x5fb   :  { %3859 = vmatpush3.msra.mxu1 %v4213_v28  ;;  %v3971_v28 = vld [vmem:[%s4794_s5] ss:$0 sm:$0xff] }
 0x5fc   :  { %3874 = vmatprep.subr.mxu1 %v4043_v1  ;;  %v139_v10 = vadd.f32 %v3971_v28, %v124_v27 }
 0x67f   :  { %v2350_v7 = vpop.xlane.xlu1 %2349 }
 0x680   :  { %v2351_v9 = vadd.f32 %v4416_v36, %v2350_v7 }
 0x682   :  { %3252 = vst.msk [vmem:[%s4798_s9 + $0x20] sm:$0xff] %vm864_vm2, %v2351_v9 }
 0x6a1   :  { %v2423_v11 = vpop.f32.mrf.mxu1  ;;  %v2495_v21 = vpop.f32.mrf.mxu0 }
 0x6a2   :  { %v2427_v22 = vadd.f32 %v2423_v11, %v139_v10  ;;  %v2496_v29 = vadd.f32 %v4255_v42, %v2495_v21 }
 0x6a3   :  { %v3796_v23 = vpop.f32.mrf.mxu1  ;;  %v3807_v25 = vpop.f32.mrf.mxu0 }
 0x6a4   :  { %3953 = vtanh.f32 %v2427_v22 }
 0x6aa   :  { %v2568_v31 = vpop.f32.mrf.mxu1  ;;  %v2640_v32 = vpop.f32.mrf.mxu0 }
 0x6ab   :  { %v2572_v17 = vadd.f32 %v2568_v31, %v2496_v29  ;;  %v2641_v38 = vadd.f32 %v4347_v18, %v2640_v32 }
 0x6ac   :  { %v3818_v33 = vpop.f32.mrf.mxu1  ;;  %v3829_v37 = vpop.f32.mrf.mxu0 }
 0x6ad   :  { %3955 = vtanh.f32 %v2572_v17 }
 0x6b1   :  { %v3954_v20 = vpop.eup %3953 }
 0x6b2   :  { %3181 = vst.msk [vmem:[#allocation8] sm:$0xff] %vm186_vm1, %v3954_v20  ;;  %3850 = vmatmul.mubr.msk.f32.vlgmr.msra.gmra.mxu0 %vm186_vm1, %v3954_v20 }
 0x6b3   :  { %v2713_v39 = vpop.f32.mrf.mxu1  ;;  %3864 = vmatpush3.msra.mxu0 %v4261_v47  ;;  %3871 = vmatprep.mubr.msk.f32.mxu0 %vm4044_vm0, %v4043_v1 }
 0x6b4   :  { %v2717_v42 = vadd.f32 %v2713_v39, %v2641_v38  ;;  %3865 = vmatprep.subr.mxu0 %v4043_v1 }
 0x6b5   :  { %v3840_v3 = vpop.f32.mrf.mxu1  ;;  %3866 = vmatpush3.msra.mxu0 %v4268_v49 }
 0x6b6   :  { %3957 = vtanh.f32 %v2717_v42  ;;  %3867 = vmatprep.subr.mxu0 %v4043_v1 }
 0x6b7   :  { %3868 = vmatpush3.msra.mxu0 %v4277_v50 }
 0x6b8   :  { %3869 = vmatprep.subr.mxu0 %v4043_v1 }
 0x6b9   :  { %3870 = vmatpush3.msra.mxu0 %v4288_v51 }
 0x6ba   :  { %v3956_v4 = vpop.eup %3955  ;;  %3885 = vmatprep.subr.mxu0 %v4043_v1 }
 0x6bb   :  { %3861 = vmatmul.mubr.msk.f32.vlgmr.msra.gmra.mxu1 %vm186_vm1, %v3956_v4  ;;  %3872 = vmatmul.mubr.msk.f32.vlgmr.msra.gmra.mxu0 %vm186_vm1, %v3956_v4 }
 0x6bc   :  { %3875 = vmatpush3.msra.mxu1 %v4298_v53  ;;  %3882 = vmatprep.mubr.msk.f32.mxu1 %vm4044_vm0, %v4043_v1 }
 0x6bd   :  { %3876 = vmatprep.subr.mxu1 %v4043_v1  ;;  %3886 = vmatpush3.msra.mxu0 %v4261_v47 }
 0x6be   :  { %3877 = vmatpush3.msra.mxu1 %v4303_v54  ;;  %3887 = vmatprep.subr.mxu0 %v4043_v1 }
 0x6bf   :  { %3878 = vmatprep.subr.mxu1 %v4043_v1  ;;  %3888 = vmatpush3.msra.mxu0 %v4268_v49 }
 0x6c0   :  { %3879 = vmatpush3.msra.mxu1 %v4310_v55  ;;  %3889 = vmatprep.subr.mxu0 %v4043_v1 }
 0x6c1   :  { %3880 = vmatprep.subr.mxu1 %v4043_v1  ;;  %3890 = vmatpush3.msra.mxu0 %v4277_v50 }
 0x6c2   :  { %3881 = vmatpush3.msra.mxu1 %v4316_v56  ;;  %3891 = vmatprep.subr.mxu0 %v4043_v1 }
 0x6c3   :  { %v3958_v47 = vpop.eup %3957  ;;  %3892 = vmatpush3.msra.mxu0 %v4288_v51  ;;  %3893 = vmatprep.mubr.msk.f32.mxu0 %vm4044_vm0, %v4043_v1 }
 0x6c4   :  { %3883 = vmatmul.mubr.msk.f32.vlgmr.msra.gmra.mxu1 %vm186_vm1, %v3958_v47  ;;  %v2719_v49 = vmul.f32 %v3958_v47, %v4387_v30  ;;  %3896 = vmatprep.subr.mxu1 %v4043_v1 }
 0x6c5   :  { %3897 = vmatpush3.msra.mxu1 %v4298_v53  ;;  %3904 = vmatprep.mubr.msk.f32.mxu1 %vm4044_vm0, %v4043_v1 }
 0x6c6   :  { %v2720_v50 = vsel %vm186_vm1, %v2719_v49, 0.0  ;;  %3898 = vmatprep.subr.mxu1 %v4043_v1 }
 0x6c7   :  { %2721 = vadd.xlane.f32.xlu0 %v2720_v50  ;;  %3899 = vmatpush3.msra.mxu1 %v4303_v54  ;;  %v3972_v54 = vld [vmem:[%s4794_s5 + $0x1] ss:$0 sm:$0xff] }
 0x6c8   :  { %3900 = vmatprep.subr.mxu1 %v4043_v1 }
 0x6c9   :  { %3901 = vmatpush3.msra.mxu1 %v4310_v55 }
 0x6ca   :  { %3902 = vmatprep.subr.mxu1 %v4043_v1 }
 0x6cb   :  { %3903 = vmatpush3.msra.mxu1 %v4316_v56 }
 0x750   :  { %v2722_v51 = vpop.xlane.xlu0 %2721 }
 0x751   :  { %v2723_v53 = vadd.f32 %v4416_v36, %v2722_v51 }
 0x753   :  { %3258 = vst.msk [vmem:[%s4798_s9 + $0x28] sm:$0xff] %vm864_vm2, %v2723_v53 }
 0x772   :  { %v2795_v6 = vpop.f32.mrf.mxu0 }
 0x773   :  { %v2796_v12 = vadd.f32 %v3972_v54, %v2795_v6 }
 0x774   :  { %v3851_v8 = vpop.f32.mrf.mxu0 }
 0x77b   :  { %v2868_v55 = vpop.f32.mrf.mxu1  ;;  %v2940_v13 = vpop.f32.mrf.mxu0 }
 0x77c   :  { %v2872_v1 = vadd.f32 %v2868_v55, %v2796_v12  ;;  %v2941_v40 = vadd.f32 %v4347_v18, %v2940_v13 }
 0x77d   :  { %v3862_v14 = vpop.f32.mrf.mxu1  ;;  %v3873_v56 = vpop.f32.mrf.mxu0 }
 0x77e   :  { %3959 = vtanh.f32 %v2872_v1 }
 0x784   :  { %v3013_v41 = vpop.f32.mrf.mxu1 }
 0x785   :  { %v3017_v43 = vadd.f32 %v3013_v41, %v2941_v40 }
 0x786   :  { %v3884_v15 = vpop.f32.mrf.mxu1 }
 0x787   :  { %3961 = vtanh.f32 %v3017_v43 }
 0x78b   :  { %v3960_v44 = vpop.eup %3959 }
 0x78c   :  { %3183 = vst.msk [vmem:[#allocation8 + $0x8] sm:$0xff] %vm186_vm1, %v3960_v44  ;;  %3894 = vmatmul.mubr.msk.f32.vlgmr.msra.gmra.mxu0 %vm186_vm1, %v3960_v44 }
 0x794   :  { %v3962_v45 = vpop.eup %3961 }
 0x795   :  { %3905 = vmatmul.mubr.msk.f32.vlgmr.msra.gmra.mxu1 %vm186_vm1, %v3962_v45  ;;  %v3019_v46 = vmul.f32 %v3962_v45, %v4387_v30 }
 0x797   :  { %v3020_v34 = vsel %vm186_vm1, %v3019_v46, 0.0 }
 0x798   :  { %3021 = vadd.xlane.f32.xlu1 %v3020_v34 }
 0x821   :  { %v3022_v48 = vpop.xlane.xlu1 %3021 }
 0x822   :  { %v3023_v52 = vadd.f32 %v4416_v36, %v3022_v48 }
 0x824   :  { %3263 = vst.msk [vmem:[%s4798_s9 + $0x30] sm:$0xff] %vm864_vm2, %v3023_v52 }
 0x84c   :  { %v3095_v57 = vpop.f32.mrf.mxu0 }
 0x84d   :  { %v3096_v16 = vadd.f32 %v4347_v18, %v3095_v57 }
 0x84e   :  { %v3895_v58 = vpop.f32.mrf.mxu0 }
 0x855   :  { %v3168_v19 = vpop.f32.mrf.mxu1 }
 0x856   :  { %v3172_v35 = vadd.f32 %v3168_v19, %v3096_v16 }
 0x857   :  { %v3906_v24 = vpop.f32.mrf.mxu1 }
 0x858   :  { %3963 = vtanh.f32 %v3172_v35 }
 0x865   :  { %v3964_v59 = vpop.eup %3963 }
 0x866   :  { %3185 = vst.msk [vmem:[#allocation8 + $0x10] sm:$0xff] %vm186_vm1, %v3964_v59  ;;  %v3174_v60 = vmul.f32 %v3964_v59, %v4387_v30 }
 0x868   :  { %v3175_v61 = vsel %vm186_vm1, %v3174_v60, 0.0 }
 0x869   :  { %3176 = vadd.xlane.f32.xlu0 %v3175_v61 }
 0x86a   :  { %4024 = shalt.err (!%p4021_p0)
}
 0x86b   :  { %3197 = dma.vmem_to_hbm [thread:$0]  %s3192_s20, 384, %s4797_s8, [#allocation5], %s4040_s14, %s4040_s14, %s4041_s15  }
 0x8f2   :  { %v3177_v18 = vpop.xlane.xlu0 %3176 }
 0x8f3   :  { %v3178_v30 = vadd.f32 %v4416_v36, %v3177_v18 }
 0x8f5   :  { %3266 = vst.msk [vmem:[%s4798_s9 + $0x38] sm:$0xff] %vm864_vm2, %v3178_v30 }
 0x8f6   :  { %4037 = dma.done.wait [#allocation5], 384  }
 0x8f7   :  { %4038 = vsyncadd [#allocation5], 4294966912 }
 0x8f8   :  { %3205 = vsyncpa [#allocation4], 1 }
 0x8f9   :  { %3206 = vsyncpa [#allocation7], 1 }
 0x8fa   :  { %3207 = vsyncpa [#allocation5], 1 }

</bundles_post_ra>
